<compile_context>
chip_gen: v5e
topology: v5e:2x2
jax: 0.10.0
libtpu: 0.0.40
codegen_flags: <defaults>
</compile_context>

<pallas_src>
import functools

import jax
import jax.numpy as jnp
from jax.experimental import pallas as pl
from jax.experimental.pallas import tpu as pltpu


# bf16 MXU operands on all of v5e/v6e/v7x; f32 accumulation is kept via
# preferred_element_type and all elementwise gate/state math stays f32.
MATMUL_DTYPE = jnp.bfloat16


def _round_up(n, m):
    return ((n + m - 1) // m) * m


def _pick_tile(n, candidates):
    for c in candidates:
        if n % c == 0:
            return c
    return n   # full extent (always a legal block size)


def _vmem_limit_bytes():
    # Size scoped VMEM against the chip (v5e/v6e: 128 MiB, v7x: 64 MiB).
    try:
        cap = pltpu.get_tpu_info().vmem_capacity_bytes
    except Exception:
        cap = 128 * 1024 * 1024
    return int(min(100 * 1024 * 1024, cap * 7 // 8))


# ----------------------------------------------------------------------------
# Fused multi-layer LSTM kernel (single pallas_call, chunked over time).
# ----------------------------------------------------------------------------
def fused_lstm_kernel(x_ref, *refs, num_layers):
    # refs = [wih_0, whh_0, b_0, ..., wih_{L-1}, whh_{L-1}, b_{L-1},
    #         out_ref, hN_ref, cN_ref, xg_sc, seq_sc, h_sc, c_sc]
    w_refs = refs[: 3 * num_layers]
    (out_ref, hN_ref, cN_ref, xg_sc, seq_sc, h_sc, c_sc) = refs[3 * num_layers:]

    Tc = x_ref.shape[0]                 # time steps in this chunk
    nl, bb, H = hN_ref.shape
    tc = pl.program_id(1)

    # Zero-init carried state at the first time chunk of each batch block.
    @pl.when(tc == 0)
    def _():
        h_sc[...] = jnp.zeros_like(h_sc)
        c_sc[...] = jnp.zeros_like(c_sc)

    for l in range(num_layers):
        wih_ref, whh_ref, b_ref = w_refs[3 * l: 3 * l + 3]
        src_ref = x_ref if l == 0 else seq_sc           # layer input (this chunk)
        Din = src_ref.shape[2]

        # --- Batched input projection for the whole chunk (one MXU op). ------
        # TODO(synk): for Din/H not multiples of 128 this reshape is a relayout
        # copy; realistic model sizes (multiples of 128) make it free.
        xin = src_ref[...].reshape(Tc * bb, Din).astype(MATMUL_DTYPE)
        xg = (jnp.dot(xin, wih_ref[...], preferred_element_type=jnp.float32)
              + b_ref[...])                              # f32 gates
        xg_sc[...] = xg.reshape(Tc, bb, 4 * H)

        whh = whh_ref[...]                               # bf16, VMEM-resident
        # Last layer writes straight into the per-chunk output block; earlier
        # layers write the inter-layer scratch (already consumed by the batched
        # projection above, so it can be overwritten).
        out_dst = out_ref if l == num_layers - 1 else seq_sc

        def step(t, carry, whh=whh, out_dst=out_dst):
            h, c = carry
            # Serial critical path: ONE small matmul + elementwise per step.
            gates = xg_sc[t] + jnp.dot(h.astype(MATMUL_DTYPE), whh,
                                       preferred_element_type=jnp.float32)
            # Packed gate order is (i, f, o | g): one sigmoid over 3H, one tanh.
            sig = jax.nn.sigmoid(gates[:, :3 * H])
            g_g = jnp.tanh(gates[:, 3 * H:])
            i_g = sig[:, 0 * H:1 * H]
            f_g = sig[:, 1 * H:2 * H]
            o_g = sig[:, 2 * H:3 * H]
            c = f_g * c + i_g * g_g                      # f32 state update
            h = o_g * jnp.tanh(c)
            out_dst[t] = h
            return (h, c)

        h_f, c_f = jax.lax.fori_loop(0, Tc, step, (h_sc[l], c_sc[l]),
                                     unroll=True)
        h_sc[l] = h_f
        c_sc[l] = c_f

    # Final states: the hN/cN output blocks are revisited across time chunks
    # (constant index_map) -> written to HBM once per batch block.
    @pl.when(tc == pl.num_programs(1) - 1)
    def _():
        hN_ref[...] = h_sc[...]
        cN_ref[...] = c_sc[...]


def fused_lstm(x, layers, batch_block=None, time_chunk=32):
    """x: (T, B, D) f32; layers: list of dicts with pre-packed wih_t/whh_t/bias.

    Returns (out (T,B,H), h_n (L,B,H), c_n (L,B,H)).
    """
    T, B, D = x.shape
    nl = len(layers)
    H = layers[0]["whh_t"].shape[0]

    # Megacore batch split only pays off when each block still has plenty of
    # rows feeding the (bb,H)x(H,4H) recurrence matmul; otherwise keep one block.
    if batch_block is None:
        bb = B // 2 if (B >= 512 and (B // 2) % 8 == 0) else B
    else:
        bb = batch_block
    assert B % bb == 0 and (bb % 8 == 0 or bb == B)
    nb = B // bb

    # Time-chunk size: bounds VMEM residency of xg/seq/out buffers and lets the
    # auto-pipeline overlap chunk DMA with the serial recurrence.
    Tc = _pick_tile(T, (time_chunk, 16, 8, 4, 2, 1))
    ntc = T // Tc

    in_specs = [pl.BlockSpec((Tc, bb, D), lambda b, t: (t, b, 0))]
    flat_w = []
    for layer in layers:
        Din = layer["wih_t"].shape[0]
        in_specs += [
            pl.BlockSpec((Din, 4 * H), lambda b, t: (0, 0)),   # W_ih^T (resident)
            pl.BlockSpec((H, 4 * H), lambda b, t: (0, 0)),     # W_hh^T (resident)
            pl.BlockSpec((1, 4 * H), lambda b, t: (0, 0)),     # b_ih + b_hh
        ]
        flat_w += [layer["wih_t"], layer["whh_t"], layer["bias"]]

    kernel = functools.partial(fused_lstm_kernel, num_layers=nl)

    out, h_n, c_n = pl.pallas_call(
        kernel,
        out_shape=(jax.ShapeDtypeStruct((T, B, H), jnp.float32),
                   jax.ShapeDtypeStruct((nl, B, H), jnp.float32),
                   jax.ShapeDtypeStruct((nl, B, H), jnp.float32)),
        grid_spec=pltpu.PrefetchScalarGridSpec(
            num_scalar_prefetch=0,
            grid=(nb, ntc),                               # (batch blocks, time chunks)
            in_specs=in_specs,
            out_specs=[
                pl.BlockSpec((Tc, bb, H), lambda b, t: (t, b, 0)),   # streamed per chunk
                pl.BlockSpec((nl, bb, H), lambda b, t: (0, b, 0)),   # final h (revisited)
                pl.BlockSpec((nl, bb, H), lambda b, t: (0, b, 0)),   # final c (revisited)
            ],
            scratch_shapes=[
                pltpu.VMEM((Tc, bb, 4 * H), jnp.float32),  # per-chunk x-proj gates
                pltpu.VMEM((Tc, bb, H), jnp.float32),      # per-chunk inter-layer seq
                pltpu.VMEM((nl, bb, H), jnp.float32),      # carried h per layer
                pltpu.VMEM((nl, bb, H), jnp.float32),      # carried c per layer
            ],
        ),
        compiler_params=pltpu.CompilerParams(
            dimension_semantics=("parallel", "arbitrary"),
            vmem_limit_bytes=_vmem_limit_bytes()),
    )(x, *flat_w)
    return out, h_n, c_n


# ----------------------------------------------------------------------------
# Decoder (linear) kernel, vocab-tile outer so the weight tile stays resident.
# ----------------------------------------------------------------------------
def decoder_kernel(x_ref, w_ref, b_ref, o_ref):
    o_ref[...] = (jnp.dot(x_ref[...].astype(MATMUL_DTYPE), w_ref[...],
                          preferred_element_type=jnp.float32)
                  + b_ref[...])


def decoder_linear(x2d, w_t, b_row):
    """x2d: (N, H) f32; w_t: (H, Vp) bf16 pre-transposed/padded; b_row: (1, Vp).

    Returns (N, Vp) f32 logits (caller slices the padded vocab).
    """
    N, H = x2d.shape
    Vp = w_t.shape[1]
    Np = _round_up(N, 8)
    if Np != N:
        x2d = jnp.pad(x2d, ((0, Np - N), (0, 0)))
    tn = _pick_tile(Np, (256, 128, 64, 32, 16, 8))
    tv = _pick_tile(Vp, (1024, 512, 256, 128))
    out = pl.pallas_call(
        decoder_kernel,
        out_shape=jax.ShapeDtypeStruct((Np, Vp), jnp.float32),
        grid_spec=pltpu.PrefetchScalarGridSpec(
            num_scalar_prefetch=0,
            # Vocab tiles OUTER, row tiles INNER: the (H, tv) weight block index
            # is constant across the inner axis, so each tile of the big decoder
            # weight is streamed from HBM exactly once (not N//tn times).
            grid=(Vp // tv, Np // tn),
            in_specs=[pl.BlockSpec((tn, H), lambda j, i: (i, 0)),
                      pl.BlockSpec((H, tv), lambda j, i: (0, j)),
                      pl.BlockSpec((1, tv), lambda j, i: (0, j))],
            out_specs=pl.BlockSpec((tn, tv), lambda j, i: (i, j)),
        ),
        compiler_params=pltpu.CompilerParams(
            dimension_semantics=("parallel", "parallel"),
            vmem_limit_bytes=_vmem_limit_bytes()),
    )(x2d, w_t, b_row)
    return out[:N]


# ----------------------------------------------------------------------------
# Parameter packing (done once, not per forward call).
# ----------------------------------------------------------------------------
def pack_params(params):
    H = params["lstm"][0]["w_hh"].shape[1]

    def _perm(w):
        # torch gate order (i, f, g, o) -> (i, f, o, g): the three sigmoid gates
        # become one contiguous 3H slice and tanh one H slice.
        return jnp.concatenate([w[:2 * H], w[3 * H:4 * H], w[2 * H:3 * H]], axis=0)

    packed = {"encoder_w": params["encoder_w"], "lstm": []}
    for layer in params["lstm"]:
        packed["lstm"].append({
            "wih_t": jnp.transpose(_perm(layer["w_ih"])).astype(MATMUL_DTYPE),
            "whh_t": jnp.transpose(_perm(layer["w_hh"])).astype(MATMUL_DTYPE),
            "bias": _perm(layer["b_ih"] + layer["b_hh"]).reshape(1, -1),  # f32
        })

    # Decoder: pre-transpose, pad vocab to a lane-dense multiple of 128 and
    # pre-cast to bf16 (the decoder weight dominates HBM traffic).
    V, _ = params["decoder_w"].shape
    Vp = _round_up(V, 128)
    wt = jnp.pad(jnp.transpose(params["decoder_w"]), ((0, 0), (0, Vp - V)))
    b = jnp.pad(params["decoder_b"], (0, Vp - V))
    packed["decoder_wt"] = wt.astype(MATMUL_DTYPE)        # (H, Vp) bf16
    packed["decoder_b"] = b.reshape(1, -1)                 # (1, Vp) f32
    return packed


# ----------------------------------------------------------------------------
# Full model forward (eval mode: dropout == identity).
# ----------------------------------------------------------------------------
# TODO(synk): optional non-None initial hidden state is not plumbed into the
# fused kernel; hidden=None (zero init) semantics are implemented, matching the
# default PyTorch call.
@jax.jit
def lm_model_lstm_forward(tokens, packed):
    nvoc = packed["encoder_w"].shape[0]                    # static inside jit
    emb = jnp.take(packed["encoder_w"], tokens, axis=0)    # (T, B, D)
    out, h_n, c_n = fused_lstm(emb, packed["lstm"])
    T, B, H = out.shape
    decoded = decoder_linear(out.reshape(T * B, H),
                             packed["decoder_wt"], packed["decoder_b"])
    decoded = decoded[:, :nvoc].reshape(T, B, nvoc)        # drop vocab padding
    return decoded, (h_n, c_n)


# ----------------------------------------------------------------------------
# Pure-JAX reference for validation (f32, torch gate order).
# ----------------------------------------------------------------------------
def reference_forward(tokens, params):
    emb = jnp.take(params["encoder_w"], tokens, axis=0)
    x = emb
    h_list, c_list = [], []
    for layer in params["lstm"]:
        T, B, _ = x.shape
        H = layer["w_hh"].shape[1]
        h = jnp.zeros((B, H), jnp.float32)
        c = jnp.zeros((B, H), jnp.float32)
        outs = []
        for t in range(T):
            gates = (x[t] @ layer["w_ih"].T + layer["b_ih"]
                     + h @ layer["w_hh"].T + layer["b_hh"])
            i_g = jax.nn.sigmoid(gates[:, 0 * H:1 * H])
            f_g = jax.nn.sigmoid(gates[:, 1 * H:2 * H])
            g_g = jnp.tanh(gates[:, 2 * H:3 * H])
            o_g = jax.nn.sigmoid(gates[:, 3 * H:4 * H])
            c = f_g * c + i_g * g_g
            h = o_g * jnp.tanh(c)
            outs.append(h)
        x = jnp.stack(outs, axis=0)
        h_list.append(h)
        c_list.append(c)
    T, B, H = x.shape
    dec = x.reshape(T * B, H) @ params["decoder_w"].T + params["decoder_b"]
    return dec.reshape(T, B, -1), (jnp.stack(h_list), jnp.stack(c_list))


# ----------------------------------------------------------------------------
# Deterministic parameter init (mirrors nn.Module __init__ / init_weights).
# ----------------------------------------------------------------------------
def init_params(key, nvoc, dim, hidden, num_layers):
    init_uniform = 0.1
    stdv = 1.0 / jnp.sqrt(hidden)
    keys = jax.random.split(key, 2 + 4 * num_layers)
    params = {
        "encoder_w": jax.random.uniform(keys[0], (nvoc, dim), jnp.float32,
                                        -init_uniform, init_uniform),
        "decoder_w": jax.random.uniform(keys[1], (nvoc, hidden), jnp.float32,
                                        -init_uniform, init_uniform),
        "decoder_b": jnp.zeros((nvoc,), jnp.float32),
        "lstm": [],
    }
    for l in range(num_layers):
        in_dim = dim if l == 0 else hidden
        k = keys[2 + 4 * l: 2 + 4 * (l + 1)]
        params["lstm"].append({
            "w_ih": jax.random.uniform(k[0], (4 * hidden, in_dim), jnp.float32,
                                       -stdv, stdv),
            "w_hh": jax.random.uniform(k[1], (4 * hidden, hidden), jnp.float32,
                                       -stdv, stdv),
            "b_ih": jax.random.uniform(k[2], (4 * hidden,), jnp.float32,
                                       -stdv, stdv),
            "b_hh": jax.random.uniform(k[3], (4 * hidden,), jnp.float32,
                                       -stdv, stdv),
        })
    return params


if __name__ == "__main__":
    NVOC, DIM, HIDDEN, NUM_LAYERS = 128, 32, 32, 2
    T, B = 8, 8

    key = jax.random.PRNGKey(0)
    k_param, k_tok = jax.random.split(key)
    params = init_params(k_param, NVOC, DIM, HIDDEN, NUM_LAYERS)
    packed = pack_params(params)            # one-time transpose / gate-perm / bf16 cast
    tokens = jax.random.randint(k_tok, (T, B), 0, NVOC, dtype=jnp.int32)

    logits, (h_n, c_n) = lm_model_lstm_forward(tokens, packed)
    jax.block_until_ready((logits, h_n, c_n))

    # Sanity check against the pure-JAX f32 reference (bf16 MXU operands ->
    # slightly looser tolerance than pure f32).
    ref_logits, (ref_h, ref_c) = reference_forward(tokens, params)
    assert logits.shape == (T, B, NVOC)
    assert h_n.shape == (NUM_LAYERS, B, HIDDEN) and c_n.shape == (NUM_LAYERS, B, HIDDEN)
    assert jnp.allclose(logits, ref_logits, atol=2e-2, rtol=2e-2)
    assert jnp.allclose(h_n, ref_h, atol=2e-2, rtol=2e-2)
    assert jnp.allclose(c_n, ref_c, atol=2e-2, rtol=2e-2)

    print("KERNEL_OK")
</pallas_src>

<mosaic_0001>
module attributes {stable_mosaic.version = 11 : i64} {
  func.func @decoder_kernel(%arg0: i32, %arg1: i32, %arg2: memref<64x32xf32, #tpu.memory_space<vmem>>, %arg3: memref<32x128xbf16, #tpu.memory_space<vmem>>, %arg4: memref<1x128xf32, #tpu.memory_space<vmem>>, %arg5: memref<64x128xf32, #tpu.memory_space<vmem>>) attributes {dimension_semantics = [#tpu.dimension_semantics<parallel>, #tpu.dimension_semantics<parallel>], iteration_bounds = array<i64: 1, 1>, scalar_prefetch = 0 : i64, scratch_operands = 0 : i64, tpu.core_type = #tpu.core_type<tc>, window_params = [{transform_indices = @transform_0, window_bounds = array<i64: 64, 32>}, {transform_indices = @transform_1, window_bounds = array<i64: 32, 128>}, {transform_indices = @transform_2, window_bounds = array<i64: 1, 128>}, {transform_indices = @transform_3, window_bounds = array<i64: 64, 128>}]} {
    %c0 = arith.constant 0 : index
    %c0_0 = arith.constant 0 : index
    %0 = vector.load %arg2[%c0, %c0_0] : memref<64x32xf32, #tpu.memory_space<vmem>>, vector<64x32xf32>
    %1 = arith.truncf %0 : vector<64x32xf32> to vector<64x32xbf16>
    %c0_1 = arith.constant 0 : index
    %c0_2 = arith.constant 0 : index
    %2 = vector.load %arg3[%c0_1, %c0_2] : memref<32x128xbf16, #tpu.memory_space<vmem>>, vector<32x128xbf16>
    %cst = arith.constant dense<0.000000e+00> : vector<64x128xf32>
    %3 = tpu.matmul %1, %2, %cst {dimension_numbers = #tpu.dot_dimension_numbers<[1], [0], [0], [1], [0, 0, 1, 1], [], []>} : vector<64x32xbf16>, vector<32x128xbf16>, vector<64x128xf32> -> vector<64x128xf32>
    %c0_3 = arith.constant 0 : index
    %c0_4 = arith.constant 0 : index
    %4 = vector.load %arg4[%c0_3, %c0_4] : memref<1x128xf32, #tpu.memory_space<vmem>>, vector<1x128xf32>
    %5 = vector.broadcast %4 : vector<1x128xf32> to vector<64x128xf32>
    %6 = arith.addf %3, %5 : vector<64x128xf32>
    %c0_5 = arith.constant 0 : index
    %c0_6 = arith.constant 0 : index
    %7 = vector.load %arg5[%c0_5, %c0_6] : memref<64x128xf32, #tpu.memory_space<vmem>>, vector<64x128xf32>
    tpu.vector_store %arg5[%c0_5, %c0_6], %6 {strides = array<i32>} : memref<64x128xf32, #tpu.memory_space<vmem>>, vector<64x128xf32>,
    return
  }
  func.func @transform_0(%arg0: i32, %arg1: i32) -> (i32, i32) {
    %c0_i32 = arith.constant 0 : i32
    %c0_i32_0 = arith.constant 0 : i32
    return %arg1, %c0_i32 : i32, i32
  }
  func.func @transform_1(%arg0: i32, %arg1: i32) -> (i32, i32) {
    %c0_i32 = arith.constant 0 : i32
    %c0_i32_0 = arith.constant 0 : i32
    return %c0_i32, %arg0 : i32, i32
  }
  func.func @transform_2(%arg0: i32, %arg1: i32) -> (i32, i32) {
    %c0_i32 = arith.constant 0 : i32
    %c0_i32_0 = arith.constant 0 : i32
    return %c0_i32, %arg0 : i32, i32
  }
  func.func @transform_3(%arg0: i32, %arg1: i32) -> (i32, i32) {
    %c0_i32 = arith.constant 0 : i32
    return %arg1, %arg0 : i32, i32
  }
}

module attributes {stable_mosaic.version = 11 : i64} {
  func.func @fused_lstm_kernel(%arg0: i32, %arg1: i32, %arg2: memref<8x8x32xf32, #tpu.memory_space<vmem>>, %arg3: memref<32x128xbf16, #tpu.memory_space<vmem>>, %arg4: memref<32x128xbf16, #tpu.memory_space<vmem>>, %arg5: memref<1x128xf32, #tpu.memory_space<vmem>>, %arg6: memref<32x128xbf16, #tpu.memory_space<vmem>>, %arg7: memref<32x128xbf16, #tpu.memory_space<vmem>>, %arg8: memref<1x128xf32, #tpu.memory_space<vmem>>, %arg9: memref<8x8x32xf32, #tpu.memory_space<vmem>>, %arg10: memref<2x8x32xf32, #tpu.memory_space<vmem>>, %arg11: memref<2x8x32xf32, #tpu.memory_space<vmem>>, %arg12: memref<8x8x128xf32, #tpu.memory_space<vmem>>, %arg13: memref<8x8x32xf32, #tpu.memory_space<vmem>>, %arg14: memref<2x8x32xf32, #tpu.memory_space<vmem>>, %arg15: memref<2x8x32xf32, #tpu.memory_space<vmem>>) attributes {dimension_semantics = [#tpu.dimension_semantics<parallel>, #tpu.dimension_semantics<arbitrary>], iteration_bounds = array<i64: 1, 1>, scalar_prefetch = 0 : i64, scratch_operands = 4 : i64, tpu.core_type = #tpu.core_type<tc>, window_params = [{transform_indices = @transform_0, window_bounds = array<i64: 8, 8, 32>}, {pipeline_mode = #tpu.pipeline_mode<synchronous>, transform_indices = @transform_1, window_bounds = array<i64: 32, 128>}, {pipeline_mode = #tpu.pipeline_mode<synchronous>, transform_indices = @transform_2, window_bounds = array<i64: 32, 128>}, {pipeline_mode = #tpu.pipeline_mode<synchronous>, transform_indices = @transform_3, window_bounds = array<i64: 1, 128>}, {pipeline_mode = #tpu.pipeline_mode<synchronous>, transform_indices = @transform_4, window_bounds = array<i64: 32, 128>}, {pipeline_mode = #tpu.pipeline_mode<synchronous>, transform_indices = @transform_5, window_bounds = array<i64: 32, 128>}, {pipeline_mode = #tpu.pipeline_mode<synchronous>, transform_indices = @transform_6, window_bounds = array<i64: 1, 128>}, {transform_indices = @transform_7, window_bounds = array<i64: 8, 8, 32>}, {transform_indices = @transform_8, window_bounds = array<i64: 2, 8, 32>}, {transform_indices = @transform_9, window_bounds = array<i64: 2, 8, 32>}]} {
    %c0_i32 = arith.constant 0 : i32
    %0 = arith.cmpi eq, %arg1, %c0_i32 : i32
    %1 = arith.extui %0 : i1 to i32
    %c0_i32_0 = arith.constant 0 : i32
    %2 = arith.cmpi ne, %1, %c0_i32_0 : i32
    scf.if %2 {
      %cst_156 = arith.constant 0.000000e+00 : f32
      %464 = vector.broadcast %cst_156 : f32 to vector<2x8x32xf32>
      %c0_157 = arith.constant 0 : index
      %c0_158 = arith.constant 0 : index
      %c0_159 = arith.constant 0 : index
      %465 = vector.load %arg14[%c0_157, %c0_158, %c0_159] : memref<2x8x32xf32, #tpu.memory_space<vmem>>, vector<2x8x32xf32>
      tpu.vector_store %arg14[%c0_157, %c0_158, %c0_159], %464 {strides = array<i32>} : memref<2x8x32xf32, #tpu.memory_space<vmem>>, vector<2x8x32xf32>,
      %cst_160 = arith.constant 0.000000e+00 : f32
      %466 = vector.broadcast %cst_160 : f32 to vector<2x8x32xf32>
      %c0_161 = arith.constant 0 : index
      %c0_162 = arith.constant 0 : index
      %c0_163 = arith.constant 0 : index
      %467 = vector.load %arg15[%c0_161, %c0_162, %c0_163] : memref<2x8x32xf32, #tpu.memory_space<vmem>>, vector<2x8x32xf32>
      tpu.vector_store %arg15[%c0_161, %c0_162, %c0_163], %466 {strides = array<i32>} : memref<2x8x32xf32, #tpu.memory_space<vmem>>, vector<2x8x32xf32>,
    } else {
    }
    %c0 = arith.constant 0 : index
    %c0_1 = arith.constant 0 : index
    %c0_2 = arith.constant 0 : index
    %3 = vector.load %arg2[%c0, %c0_1, %c0_2] : memref<8x8x32xf32, #tpu.memory_space<vmem>>, vector<8x8x32xf32>
    %4 = vector.shape_cast %3 : vector<8x8x32xf32> to vector<64x32xf32>
    %5 = arith.truncf %4 : vector<64x32xf32> to vector<64x32xbf16>
    %c0_3 = arith.constant 0 : index
    %c0_4 = arith.constant 0 : index
    %6 = vector.load %arg3[%c0_3, %c0_4] : memref<32x128xbf16, #tpu.memory_space<vmem>>, vector<32x128xbf16>
    %cst = arith.constant dense<0.000000e+00> : vector<64x128xf32>
    %7 = tpu.matmul %5, %6, %cst {dimension_numbers = #tpu.dot_dimension_numbers<[1], [0], [0], [1], [0, 0, 1, 1], [], []>} : vector<64x32xbf16>, vector<32x128xbf16>, vector<64x128xf32> -> vector<64x128xf32>
    %c0_5 = arith.constant 0 : index
    %c0_6 = arith.constant 0 : index
    %8 = vector.load %arg5[%c0_5, %c0_6] : memref<1x128xf32, #tpu.memory_space<vmem>>, vector<1x128xf32>
    %9 = vector.broadcast %8 : vector<1x128xf32> to vector<64x128xf32>
    %10 = arith.addf %7, %9 : vector<64x128xf32>
    %11 = vector.shape_cast %10 : vector<64x128xf32> to vector<8x8x128xf32>
    %c0_7 = arith.constant 0 : index
    %c0_8 = arith.constant 0 : index
    %c0_9 = arith.constant 0 : index
    %12 = vector.load %arg12[%c0_7, %c0_8, %c0_9] : memref<8x8x128xf32, #tpu.memory_space<vmem>>, vector<8x8x128xf32>
    tpu.vector_store %arg12[%c0_7, %c0_8, %c0_9], %11 {strides = array<i32>} : memref<8x8x128xf32, #tpu.memory_space<vmem>>, vector<8x8x128xf32>,
    %c0_10 = arith.constant 0 : index
    %c0_11 = arith.constant 0 : index
    %13 = vector.load %arg4[%c0_10, %c0_11] : memref<32x128xbf16, #tpu.memory_space<vmem>>, vector<32x128xbf16>
    %c0_12 = arith.constant 0 : index
    %c0_13 = arith.constant 0 : index
    %c0_14 = arith.constant 0 : index
    %14 = vector.load %arg14[%c0_12, %c0_13, %c0_14] : memref<2x8x32xf32, #tpu.memory_space<vmem>>, vector<1x8x32xf32>
    %15 = vector.shape_cast %14 : vector<1x8x32xf32> to vector<8x32xf32>
    %c0_15 = arith.constant 0 : index
    %c0_16 = arith.constant 0 : index
    %c0_17 = arith.constant 0 : index
    %16 = vector.load %arg15[%c0_15, %c0_16, %c0_17] : memref<2x8x32xf32, #tpu.memory_space<vmem>>, vector<1x8x32xf32>
    %17 = vector.shape_cast %16 : vector<1x8x32xf32> to vector<8x32xf32>
    %c0_i32_18 = arith.constant 0 : i32
    %18 = arith.index_cast %c0_i32_18 : i32 to index
    %c0_19 = arith.constant 0 : index
    %c0_20 = arith.constant 0 : index
    %19 = vector.load %arg12[%18, %c0_19, %c0_20] : memref<8x8x128xf32, #tpu.memory_space<vmem>>, vector<1x8x128xf32>
    %20 = vector.shape_cast %19 : vector<1x8x128xf32> to vector<8x128xf32>
    %21 = arith.truncf %15 : vector<8x32xf32> to vector<8x32xbf16>
    %cst_21 = arith.constant dense<0.000000e+00> : vector<8x128xf32>
    %22 = tpu.matmul %21, %13, %cst_21 {dimension_numbers = #tpu.dot_dimension_numbers<[1], [0], [0], [1], [0, 0, 1, 1], [], []>} : vector<8x32xbf16>, vector<32x128xbf16>, vector<8x128xf32> -> vector<8x128xf32>
    %23 = arith.addf %20, %22 : vector<8x128xf32>
    %24 = vector.extract_strided_slice %23 {offsets = [0, 0], sizes = [8, 96], strides = [1, 1]} : vector<8x128xf32> to vector<8x96xf32>
    %25 = arith.negf %24 : vector<8x96xf32>
    %26 = math.exp %25 : vector<8x96xf32>
    %cst_22 = arith.constant 1.000000e+00 : f32
    %27 = vector.broadcast %cst_22 : f32 to vector<8x96xf32>
    %28 = arith.addf %27, %26 : vector<8x96xf32>
    %29 = arith.divf %27, %28 : vector<8x96xf32>
    %30 = vector.extract_strided_slice %23 {offsets = [0, 96], sizes = [8, 32], strides = [1, 1]} : vector<8x128xf32> to vector<8x32xf32>
    %31 = math.tanh %30 : vector<8x32xf32>
    %32 = vector.extract_strided_slice %29 {offsets = [0, 0], sizes = [8, 32], strides = [1, 1]} : vector<8x96xf32> to vector<8x32xf32>
    %33 = vector.extract_strided_slice %29 {offsets = [0, 32], sizes = [8, 32], strides = [1, 1]} : vector<8x96xf32> to vector<8x32xf32>
    %34 = vector.extract_strided_slice %29 {offsets = [0, 64], sizes = [8, 32], strides = [1, 1]} : vector<8x96xf32> to vector<8x32xf32>
    %35 = arith.mulf %33, %17 : vector<8x32xf32>
    %36 = arith.mulf %32, %31 : vector<8x32xf32>
    %37 = arith.addf %35, %36 : vector<8x32xf32>
    %38 = math.tanh %37 : vector<8x32xf32>
    %39 = arith.mulf %34, %38 : vector<8x32xf32>
    %40 = arith.index_cast %c0_i32_18 : i32 to index
    %c0_23 = arith.constant 0 : index
    %c0_24 = arith.constant 0 : index
    %41 = vector.load %arg13[%40, %c0_23, %c0_24] : memref<8x8x32xf32, #tpu.memory_space<vmem>>, vector<1x8x32xf32>
    %42 = vector.shape_cast %41 : vector<1x8x32xf32> to vector<8x32xf32>
    %43 = vector.shape_cast %39 : vector<8x32xf32> to vector<1x8x32xf32>
    tpu.vector_store %arg13[%40, %c0_23, %c0_24], %43 {strides = array<i32>} : memref<8x8x32xf32, #tpu.memory_space<vmem>>, vector<1x8x32xf32>,
    %c1_i32 = arith.constant 1 : i32
    %44 = arith.index_cast %c1_i32 : i32 to index
    %c0_25 = arith.constant 0 : index
    %c0_26 = arith.constant 0 : index
    %45 = vector.load %arg12[%44, %c0_25, %c0_26] : memref<8x8x128xf32, #tpu.memory_space<vmem>>, vector<1x8x128xf32>
    %46 = vector.shape_cast %45 : vector<1x8x128xf32> to vector<8x128xf32>
    %47 = arith.truncf %39 : vector<8x32xf32> to vector<8x32xbf16>
    %cst_27 = arith.constant dense<0.000000e+00> : vector<8x128xf32>
    %48 = tpu.matmul %47, %13, %cst_27 {dimension_numbers = #tpu.dot_dimension_numbers<[1], [0], [0], [1], [0, 0, 1, 1], [], []>} : vector<8x32xbf16>, vector<32x128xbf16>, vector<8x128xf32> -> vector<8x128xf32>
    %49 = arith.addf %46, %48 : vector<8x128xf32>
    %50 = vector.extract_strided_slice %49 {offsets = [0, 0], sizes = [8, 96], strides = [1, 1]} : vector<8x128xf32> to vector<8x96xf32>
    %51 = arith.negf %50 : vector<8x96xf32>
    %52 = math.exp %51 : vector<8x96xf32>
    %cst_28 = arith.constant 1.000000e+00 : f32
    %53 = vector.broadcast %cst_28 : f32 to vector<8x96xf32>
    %54 = arith.addf %53, %52 : vector<8x96xf32>
    %55 = arith.divf %53, %54 : vector<8x96xf32>
    %56 = vector.extract_strided_slice %49 {offsets = [0, 96], sizes = [8, 32], strides = [1, 1]} : vector<8x128xf32> to vector<8x32xf32>
    %57 = math.tanh %56 : vector<8x32xf32>
    %58 = vector.extract_strided_slice %55 {offsets = [0, 0], sizes = [8, 32], strides = [1, 1]} : vector<8x96xf32> to vector<8x32xf32>
    %59 = vector.extract_strided_slice %55 {offsets = [0, 32], sizes = [8, 32], strides = [1, 1]} : vector<8x96xf32> to vector<8x32xf32>
    %60 = vector.extract_strided_slice %55 {offsets = [0, 64], sizes = [8, 32], strides = [1, 1]} : vector<8x96xf32> to vector<8x32xf32>
    %61 = arith.mulf %59, %37 : vector<8x32xf32>
    %62 = arith.mulf %58, %57 : vector<8x32xf32>
    %63 = arith.addf %61, %62 : vector<8x32xf32>
    %64 = math.tanh %63 : vector<8x32xf32>
    %65 = arith.mulf %60, %64 : vector<8x32xf32>
    %66 = arith.index_cast %c1_i32 : i32 to index
    %c0_29 = arith.constant 0 : index
    %c0_30 = arith.constant 0 : index
    %67 = vector.load %arg13[%66, %c0_29, %c0_30] : memref<8x8x32xf32, #tpu.memory_space<vmem>>, vector<1x8x32xf32>
    %68 = vector.shape_cast %67 : vector<1x8x32xf32> to vector<8x32xf32>
    %69 = vector.shape_cast %65 : vector<8x32xf32> to vector<1x8x32xf32>
    tpu.vector_store %arg13[%66, %c0_29, %c0_30], %69 {strides = array<i32>} : memref<8x8x32xf32, #tpu.memory_space<vmem>>, vector<1x8x32xf32>,
    %c2_i32 = arith.constant 2 : i32
    %70 = arith.index_cast %c2_i32 : i32 to index
    %c0_31 = arith.constant 0 : index
    %c0_32 = arith.constant 0 : index
    %71 = vector.load %arg12[%70, %c0_31, %c0_32] : memref<8x8x128xf32, #tpu.memory_space<vmem>>, vector<1x8x128xf32>
    %72 = vector.shape_cast %71 : vector<1x8x128xf32> to vector<8x128xf32>
    %73 = arith.truncf %65 : vector<8x32xf32> to vector<8x32xbf16>
    %cst_33 = arith.constant dense<0.000000e+00> : vector<8x128xf32>
    %74 = tpu.matmul %73, %13, %cst_33 {dimension_numbers = #tpu.dot_dimension_numbers<[1], [0], [0], [1], [0, 0, 1, 1], [], []>} : vector<8x32xbf16>, vector<32x128xbf16>, vector<8x128xf32> -> vector<8x128xf32>
    %75 = arith.addf %72, %74 : vector<8x128xf32>
    %76 = vector.extract_strided_slice %75 {offsets = [0, 0], sizes = [8, 96], strides = [1, 1]} : vector<8x128xf32> to vector<8x96xf32>
    %77 = arith.negf %76 : vector<8x96xf32>
    %78 = math.exp %77 : vector<8x96xf32>
    %cst_34 = arith.constant 1.000000e+00 : f32
    %79 = vector.broadcast %cst_34 : f32 to vector<8x96xf32>
    %80 = arith.addf %79, %78 : vector<8x96xf32>
    %81 = arith.divf %79, %80 : vector<8x96xf32>
    %82 = vector.extract_strided_slice %75 {offsets = [0, 96], sizes = [8, 32], strides = [1, 1]} : vector<8x128xf32> to vector<8x32xf32>
    %83 = math.tanh %82 : vector<8x32xf32>
    %84 = vector.extract_strided_slice %81 {offsets = [0, 0], sizes = [8, 32], strides = [1, 1]} : vector<8x96xf32> to vector<8x32xf32>
    %85 = vector.extract_strided_slice %81 {offsets = [0, 32], sizes = [8, 32], strides = [1, 1]} : vector<8x96xf32> to vector<8x32xf32>
    %86 = vector.extract_strided_slice %81 {offsets = [0, 64], sizes = [8, 32], strides = [1, 1]} : vector<8x96xf32> to vector<8x32xf32>
    %87 = arith.mulf %85, %63 : vector<8x32xf32>
    %88 = arith.mulf %84, %83 : vector<8x32xf32>
    %89 = arith.addf %87, %88 : vector<8x32xf32>
    %90 = math.tanh %89 : vector<8x32xf32>
    %91 = arith.mulf %86, %90 : vector<8x32xf32>
    %92 = arith.index_cast %c2_i32 : i32 to index
    %c0_35 = arith.constant 0 : index
    %c0_36 = arith.constant 0 : index
    %93 = vector.load %arg13[%92, %c0_35, %c0_36] : memref<8x8x32xf32, #tpu.memory_space<vmem>>, vector<1x8x32xf32>
    %94 = vector.shape_cast %93 : vector<1x8x32xf32> to vector<8x32xf32>
    %95 = vector.shape_cast %91 : vector<8x32xf32> to vector<1x8x32xf32>
    tpu.vector_store %arg13[%92, %c0_35, %c0_36], %95 {strides = array<i32>} : memref<8x8x32xf32, #tpu.memory_space<vmem>>, vector<1x8x32xf32>,
    %c3_i32 = arith.constant 3 : i32
    %96 = arith.index_cast %c3_i32 : i32 to index
    %c0_37 = arith.constant 0 : index
    %c0_38 = arith.constant 0 : index
    %97 = vector.load %arg12[%96, %c0_37, %c0_38] : memref<8x8x128xf32, #tpu.memory_space<vmem>>, vector<1x8x128xf32>
    %98 = vector.shape_cast %97 : vector<1x8x128xf32> to vector<8x128xf32>
    %99 = arith.truncf %91 : vector<8x32xf32> to vector<8x32xbf16>
    %cst_39 = arith.constant dense<0.000000e+00> : vector<8x128xf32>
    %100 = tpu.matmul %99, %13, %cst_39 {dimension_numbers = #tpu.dot_dimension_numbers<[1], [0], [0], [1], [0, 0, 1, 1], [], []>} : vector<8x32xbf16>, vector<32x128xbf16>, vector<8x128xf32> -> vector<8x128xf32>
    %101 = arith.addf %98, %100 : vector<8x128xf32>
    %102 = vector.extract_strided_slice %101 {offsets = [0, 0], sizes = [8, 96], strides = [1, 1]} : vector<8x128xf32> to vector<8x96xf32>
    %103 = arith.negf %102 : vector<8x96xf32>
    %104 = math.exp %103 : vector<8x96xf32>
    %cst_40 = arith.constant 1.000000e+00 : f32
    %105 = vector.broadcast %cst_40 : f32 to vector<8x96xf32>
    %106 = arith.addf %105, %104 : vector<8x96xf32>
    %107 = arith.divf %105, %106 : vector<8x96xf32>
    %108 = vector.extract_strided_slice %101 {offsets = [0, 96], sizes = [8, 32], strides = [1, 1]} : vector<8x128xf32> to vector<8x32xf32>
    %109 = math.tanh %108 : vector<8x32xf32>
    %110 = vector.extract_strided_slice %107 {offsets = [0, 0], sizes = [8, 32], strides = [1, 1]} : vector<8x96xf32> to vector<8x32xf32>
    %111 = vector.extract_strided_slice %107 {offsets = [0, 32], sizes = [8, 32], strides = [1, 1]} : vector<8x96xf32> to vector<8x32xf32>
    %112 = vector.extract_strided_slice %107 {offsets = [0, 64], sizes = [8, 32], strides = [1, 1]} : vector<8x96xf32> to vector<8x32xf32>
    %113 = arith.mulf %111, %89 : vector<8x32xf32>
    %114 = arith.mulf %110, %109 : vector<8x32xf32>
    %115 = arith.addf %113, %114 : vector<8x32xf32>
    %116 = math.tanh %115 : vector<8x32xf32>
    %117 = arith.mulf %112, %116 : vector<8x32xf32>
    %118 = arith.index_cast %c3_i32 : i32 to index
    %c0_41 = arith.constant 0 : index
    %c0_42 = arith.constant 0 : index
    %119 = vector.load %arg13[%118, %c0_41, %c0_42] : memref<8x8x32xf32, #tpu.memory_space<vmem>>, vector<1x8x32xf32>
    %120 = vector.shape_cast %119 : vector<1x8x32xf32> to vector<8x32xf32>
    %121 = vector.shape_cast %117 : vector<8x32xf32> to vector<1x8x32xf32>
    tpu.vector_store %arg13[%118, %c0_41, %c0_42], %121 {strides = array<i32>} : memref<8x8x32xf32, #tpu.memory_space<vmem>>, vector<1x8x32xf32>,
    %c4_i32 = arith.constant 4 : i32
    %122 = arith.index_cast %c4_i32 : i32 to index
    %c0_43 = arith.constant 0 : index
    %c0_44 = arith.constant 0 : index
    %123 = vector.load %arg12[%122, %c0_43, %c0_44] : memref<8x8x128xf32, #tpu.memory_space<vmem>>, vector<1x8x128xf32>
    %124 = vector.shape_cast %123 : vector<1x8x128xf32> to vector<8x128xf32>
    %125 = arith.truncf %117 : vector<8x32xf32> to vector<8x32xbf16>
    %cst_45 = arith.constant dense<0.000000e+00> : vector<8x128xf32>
    %126 = tpu.matmul %125, %13, %cst_45 {dimension_numbers = #tpu.dot_dimension_numbers<[1], [0], [0], [1], [0, 0, 1, 1], [], []>} : vector<8x32xbf16>, vector<32x128xbf16>, vector<8x128xf32> -> vector<8x128xf32>
    %127 = arith.addf %124, %126 : vector<8x128xf32>
    %128 = vector.extract_strided_slice %127 {offsets = [0, 0], sizes = [8, 96], strides = [1, 1]} : vector<8x128xf32> to vector<8x96xf32>
    %129 = arith.negf %128 : vector<8x96xf32>
    %130 = math.exp %129 : vector<8x96xf32>
    %cst_46 = arith.constant 1.000000e+00 : f32
    %131 = vector.broadcast %cst_46 : f32 to vector<8x96xf32>
    %132 = arith.addf %131, %130 : vector<8x96xf32>
    %133 = arith.divf %131, %132 : vector<8x96xf32>
    %134 = vector.extract_strided_slice %127 {offsets = [0, 96], sizes = [8, 32], strides = [1, 1]} : vector<8x128xf32> to vector<8x32xf32>
    %135 = math.tanh %134 : vector<8x32xf32>
    %136 = vector.extract_strided_slice %133 {offsets = [0, 0], sizes = [8, 32], strides = [1, 1]} : vector<8x96xf32> to vector<8x32xf32>
    %137 = vector.extract_strided_slice %133 {offsets = [0, 32], sizes = [8, 32], strides = [1, 1]} : vector<8x96xf32> to vector<8x32xf32>
    %138 = vector.extract_strided_slice %133 {offsets = [0, 64], sizes = [8, 32], strides = [1, 1]} : vector<8x96xf32> to vector<8x32xf32>
    %139 = arith.mulf %137, %115 : vector<8x32xf32>
    %140 = arith.mulf %136, %135 : vector<8x32xf32>
    %141 = arith.addf %139, %140 : vector<8x32xf32>
    %142 = math.tanh %141 : vector<8x32xf32>
    %143 = arith.mulf %138, %142 : vector<8x32xf32>
    %144 = arith.index_cast %c4_i32 : i32 to index
    %c0_47 = arith.constant 0 : index
    %c0_48 = arith.constant 0 : index
    %145 = vector.load %arg13[%144, %c0_47, %c0_48] : memref<8x8x32xf32, #tpu.memory_space<vmem>>, vector<1x8x32xf32>
    %146 = vector.shape_cast %145 : vector<1x8x32xf32> to vector<8x32xf32>
    %147 = vector.shape_cast %143 : vector<8x32xf32> to vector<1x8x32xf32>
    tpu.vector_store %arg13[%144, %c0_47, %c0_48], %147 {strides = array<i32>} : memref<8x8x32xf32, #tpu.memory_space<vmem>>, vector<1x8x32xf32>,
    %c5_i32 = arith.constant 5 : i32
    %148 = arith.index_cast %c5_i32 : i32 to index
    %c0_49 = arith.constant 0 : index
    %c0_50 = arith.constant 0 : index
    %149 = vector.load %arg12[%148, %c0_49, %c0_50] : memref<8x8x128xf32, #tpu.memory_space<vmem>>, vector<1x8x128xf32>
    %150 = vector.shape_cast %149 : vector<1x8x128xf32> to vector<8x128xf32>
    %151 = arith.truncf %143 : vector<8x32xf32> to vector<8x32xbf16>
    %cst_51 = arith.constant dense<0.000000e+00> : vector<8x128xf32>
    %152 = tpu.matmul %151, %13, %cst_51 {dimension_numbers = #tpu.dot_dimension_numbers<[1], [0], [0], [1], [0, 0, 1, 1], [], []>} : vector<8x32xbf16>, vector<32x128xbf16>, vector<8x128xf32> -> vector<8x128xf32>
    %153 = arith.addf %150, %152 : vector<8x128xf32>
    %154 = vector.extract_strided_slice %153 {offsets = [0, 0], sizes = [8, 96], strides = [1, 1]} : vector<8x128xf32> to vector<8x96xf32>
    %155 = arith.negf %154 : vector<8x96xf32>
    %156 = math.exp %155 : vector<8x96xf32>
    %cst_52 = arith.constant 1.000000e+00 : f32
    %157 = vector.broadcast %cst_52 : f32 to vector<8x96xf32>
    %158 = arith.addf %157, %156 : vector<8x96xf32>
    %159 = arith.divf %157, %158 : vector<8x96xf32>
    %160 = vector.extract_strided_slice %153 {offsets = [0, 96], sizes = [8, 32], strides = [1, 1]} : vector<8x128xf32> to vector<8x32xf32>
    %161 = math.tanh %160 : vector<8x32xf32>
    %162 = vector.extract_strided_slice %159 {offsets = [0, 0], sizes = [8, 32], strides = [1, 1]} : vector<8x96xf32> to vector<8x32xf32>
    %163 = vector.extract_strided_slice %159 {offsets = [0, 32], sizes = [8, 32], strides = [1, 1]} : vector<8x96xf32> to vector<8x32xf32>
    %164 = vector.extract_strided_slice %159 {offsets = [0, 64], sizes = [8, 32], strides = [1, 1]} : vector<8x96xf32> to vector<8x32xf32>
    %165 = arith.mulf %163, %141 : vector<8x32xf32>
    %166 = arith.mulf %162, %161 : vector<8x32xf32>
    %167 = arith.addf %165, %166 : vector<8x32xf32>
    %168 = math.tanh %167 : vector<8x32xf32>
    %169 = arith.mulf %164, %168 : vector<8x32xf32>
    %170 = arith.index_cast %c5_i32 : i32 to index
    %c0_53 = arith.constant 0 : index
    %c0_54 = arith.constant 0 : index
    %171 = vector.load %arg13[%170, %c0_53, %c0_54] : memref<8x8x32xf32, #tpu.memory_space<vmem>>, vector<1x8x32xf32>
    %172 = vector.shape_cast %171 : vector<1x8x32xf32> to vector<8x32xf32>
    %173 = vector.shape_cast %169 : vector<8x32xf32> to vector<1x8x32xf32>
    tpu.vector_store %arg13[%170, %c0_53, %c0_54], %173 {strides = array<i32>} : memref<8x8x32xf32, #tpu.memory_space<vmem>>, vector<1x8x32xf32>,
    %c6_i32 = arith.constant 6 : i32
    %174 = arith.index_cast %c6_i32 : i32 to index
    %c0_55 = arith.constant 0 : index
    %c0_56 = arith.constant 0 : index
    %175 = vector.load %arg12[%174, %c0_55, %c0_56] : memref<8x8x128xf32, #tpu.memory_space<vmem>>, vector<1x8x128xf32>
    %176 = vector.shape_cast %175 : vector<1x8x128xf32> to vector<8x128xf32>
    %177 = arith.truncf %169 : vector<8x32xf32> to vector<8x32xbf16>
    %cst_57 = arith.constant dense<0.000000e+00> : vector<8x128xf32>
    %178 = tpu.matmul %177, %13, %cst_57 {dimension_numbers = #tpu.dot_dimension_numbers<[1], [0], [0], [1], [0, 0, 1, 1], [], []>} : vector<8x32xbf16>, vector<32x128xbf16>, vector<8x128xf32> -> vector<8x128xf32>
    %179 = arith.addf %176, %178 : vector<8x128xf32>
    %180 = vector.extract_strided_slice %179 {offsets = [0, 0], sizes = [8, 96], strides = [1, 1]} : vector<8x128xf32> to vector<8x96xf32>
    %181 = arith.negf %180 : vector<8x96xf32>
    %182 = math.exp %181 : vector<8x96xf32>
    %cst_58 = arith.constant 1.000000e+00 : f32
    %183 = vector.broadcast %cst_58 : f32 to vector<8x96xf32>
    %184 = arith.addf %183, %182 : vector<8x96xf32>
    %185 = arith.divf %183, %184 : vector<8x96xf32>
    %186 = vector.extract_strided_slice %179 {offsets = [0, 96], sizes = [8, 32], strides = [1, 1]} : vector<8x128xf32> to vector<8x32xf32>
    %187 = math.tanh %186 : vector<8x32xf32>
    %188 = vector.extract_strided_slice %185 {offsets = [0, 0], sizes = [8, 32], strides = [1, 1]} : vector<8x96xf32> to vector<8x32xf32>
    %189 = vector.extract_strided_slice %185 {offsets = [0, 32], sizes = [8, 32], strides = [1, 1]} : vector<8x96xf32> to vector<8x32xf32>
    %190 = vector.extract_strided_slice %185 {offsets = [0, 64], sizes = [8, 32], strides = [1, 1]} : vector<8x96xf32> to vector<8x32xf32>
    %191 = arith.mulf %189, %167 : vector<8x32xf32>
    %192 = arith.mulf %188, %187 : vector<8x32xf32>
    %193 = arith.addf %191, %192 : vector<8x32xf32>
    %194 = math.tanh %193 : vector<8x32xf32>
    %195 = arith.mulf %190, %194 : vector<8x32xf32>
    %196 = arith.index_cast %c6_i32 : i32 to index
    %c0_59 = arith.constant 0 : index
    %c0_60 = arith.constant 0 : index
    %197 = vector.load %arg13[%196, %c0_59, %c0_60] : memref<8x8x32xf32, #tpu.memory_space<vmem>>, vector<1x8x32xf32>
    %198 = vector.shape_cast %197 : vector<1x8x32xf32> to vector<8x32xf32>
    %199 = vector.shape_cast %195 : vector<8x32xf32> to vector<1x8x32xf32>
    tpu.vector_store %arg13[%196, %c0_59, %c0_60], %199 {strides = array<i32>} : memref<8x8x32xf32, #tpu.memory_space<vmem>>, vector<1x8x32xf32>,
    %c7_i32 = arith.constant 7 : i32
    %200 = arith.index_cast %c7_i32 : i32 to index
    %c0_61 = arith.constant 0 : index
    %c0_62 = arith.constant 0 : index
    %201 = vector.load %arg12[%200, %c0_61, %c0_62] : memref<8x8x128xf32, #tpu.memory_space<vmem>>, vector<1x8x128xf32>
    %202 = vector.shape_cast %201 : vector<1x8x128xf32> to vector<8x128xf32>
    %203 = arith.truncf %195 : vector<8x32xf32> to vector<8x32xbf16>
    %cst_63 = arith.constant dense<0.000000e+00> : vector<8x128xf32>
    %204 = tpu.matmul %203, %13, %cst_63 {dimension_numbers = #tpu.dot_dimension_numbers<[1], [0], [0], [1], [0, 0, 1, 1], [], []>} : vector<8x32xbf16>, vector<32x128xbf16>, vector<8x128xf32> -> vector<8x128xf32>
    %205 = arith.addf %202, %204 : vector<8x128xf32>
    %206 = vector.extract_strided_slice %205 {offsets = [0, 0], sizes = [8, 96], strides = [1, 1]} : vector<8x128xf32> to vector<8x96xf32>
    %207 = arith.negf %206 : vector<8x96xf32>
    %208 = math.exp %207 : vector<8x96xf32>
    %cst_64 = arith.constant 1.000000e+00 : f32
    %209 = vector.broadcast %cst_64 : f32 to vector<8x96xf32>
    %210 = arith.addf %209, %208 : vector<8x96xf32>
    %211 = arith.divf %209, %210 : vector<8x96xf32>
    %212 = vector.extract_strided_slice %205 {offsets = [0, 96], sizes = [8, 32], strides = [1, 1]} : vector<8x128xf32> to vector<8x32xf32>
    %213 = math.tanh %212 : vector<8x32xf32>
    %214 = vector.extract_strided_slice %211 {offsets = [0, 0], sizes = [8, 32], strides = [1, 1]} : vector<8x96xf32> to vector<8x32xf32>
    %215 = vector.extract_strided_slice %211 {offsets = [0, 32], sizes = [8, 32], strides = [1, 1]} : vector<8x96xf32> to vector<8x32xf32>
    %216 = vector.extract_strided_slice %211 {offsets = [0, 64], sizes = [8, 32], strides = [1, 1]} : vector<8x96xf32> to vector<8x32xf32>
    %217 = arith.mulf %215, %193 : vector<8x32xf32>
    %218 = arith.mulf %214, %213 : vector<8x32xf32>
    %219 = arith.addf %217, %218 : vector<8x32xf32>
    %220 = math.tanh %219 : vector<8x32xf32>
    %221 = arith.mulf %216, %220 : vector<8x32xf32>
    %222 = arith.index_cast %c7_i32 : i32 to index
    %c0_65 = arith.constant 0 : index
    %c0_66 = arith.constant 0 : index
    %223 = vector.load %arg13[%222, %c0_65, %c0_66] : memref<8x8x32xf32, #tpu.memory_space<vmem>>, vector<1x8x32xf32>
    %224 = vector.shape_cast %223 : vector<1x8x32xf32> to vector<8x32xf32>
    %225 = vector.shape_cast %221 : vector<8x32xf32> to vector<1x8x32xf32>
    tpu.vector_store %arg13[%222, %c0_65, %c0_66], %225 {strides = array<i32>} : memref<8x8x32xf32, #tpu.memory_space<vmem>>, vector<1x8x32xf32>,
    %c8_i32 = arith.constant 8 : i32
    %c0_67 = arith.constant 0 : index
    %c0_68 = arith.constant 0 : index
    %c0_69 = arith.constant 0 : index
    %226 = vector.load %arg14[%c0_67, %c0_68, %c0_69] : memref<2x8x32xf32, #tpu.memory_space<vmem>>, vector<1x8x32xf32>
    %227 = vector.shape_cast %226 : vector<1x8x32xf32> to vector<8x32xf32>
    %228 = vector.shape_cast %221 : vector<8x32xf32> to vector<1x8x32xf32>
    tpu.vector_store %arg14[%c0_67, %c0_68, %c0_69], %228 {strides = array<i32>} : memref<2x8x32xf32, #tpu.memory_space<vmem>>, vector<1x8x32xf32>,
    %c0_70 = arith.constant 0 : index
    %c0_71 = arith.constant 0 : index
    %c0_72 = arith.constant 0 : index
    %229 = vector.load %arg15[%c0_70, %c0_71, %c0_72] : memref<2x8x32xf32, #tpu.memory_space<vmem>>, vector<1x8x32xf32>
    %230 = vector.shape_cast %229 : vector<1x8x32xf32> to vector<8x32xf32>
    %231 = vector.shape_cast %219 : vector<8x32xf32> to vector<1x8x32xf32>
    tpu.vector_store %arg15[%c0_70, %c0_71, %c0_72], %231 {strides = array<i32>} : memref<2x8x32xf32, #tpu.memory_space<vmem>>, vector<1x8x32xf32>,
    %c0_73 = arith.constant 0 : index
    %c0_74 = arith.constant 0 : index
    %c0_75 = arith.constant 0 : index
    %232 = vector.load %arg13[%c0_73, %c0_74, %c0_75] : memref<8x8x32xf32, #tpu.memory_space<vmem>>, vector<8x8x32xf32>
    %233 = vector.shape_cast %232 : vector<8x8x32xf32> to vector<64x32xf32>
    %234 = arith.truncf %233 : vector<64x32xf32> to vector<64x32xbf16>
    %c0_76 = arith.constant 0 : index
    %c0_77 = arith.constant 0 : index
    %235 = vector.load %arg6[%c0_76, %c0_77] : memref<32x128xbf16, #tpu.memory_space<vmem>>, vector<32x128xbf16>
    %cst_78 = arith.constant dense<0.000000e+00> : vector<64x128xf32>
    %236 = tpu.matmul %234, %235, %cst_78 {dimension_numbers = #tpu.dot_dimension_numbers<[1], [0], [0], [1], [0, 0, 1, 1], [], []>} : vector<64x32xbf16>, vector<32x128xbf16>, vector<64x128xf32> -> vector<64x128xf32>
    %c0_79 = arith.constant 0 : index
    %c0_80 = arith.constant 0 : index
    %237 = vector.load %arg8[%c0_79, %c0_80] : memref<1x128xf32, #tpu.memory_space<vmem>>, vector<1x128xf32>
    %238 = vector.broadcast %237 : vector<1x128xf32> to vector<64x128xf32>
    %239 = arith.addf %236, %238 : vector<64x128xf32>
    %240 = vector.shape_cast %239 : vector<64x128xf32> to vector<8x8x128xf32>
    %c0_81 = arith.constant 0 : index
    %c0_82 = arith.constant 0 : index
    %c0_83 = arith.constant 0 : index
    %241 = vector.load %arg12[%c0_81, %c0_82, %c0_83] : memref<8x8x128xf32, #tpu.memory_space<vmem>>, vector<8x8x128xf32>
    tpu.vector_store %arg12[%c0_81, %c0_82, %c0_83], %240 {strides = array<i32>} : memref<8x8x128xf32, #tpu.memory_space<vmem>>, vector<8x8x128xf32>,
    %c0_84 = arith.constant 0 : index
    %c0_85 = arith.constant 0 : index
    %242 = vector.load %arg7[%c0_84, %c0_85] : memref<32x128xbf16, #tpu.memory_space<vmem>>, vector<32x128xbf16>
    %c1 = arith.constant 1 : index
    %c0_86 = arith.constant 0 : index
    %c0_87 = arith.constant 0 : index
    %243 = vector.load %arg14[%c1, %c0_86, %c0_87] : memref<2x8x32xf32, #tpu.memory_space<vmem>>, vector<1x8x32xf32>
    %244 = vector.shape_cast %243 : vector<1x8x32xf32> to vector<8x32xf32>
    %c1_88 = arith.constant 1 : index
    %c0_89 = arith.constant 0 : index
    %c0_90 = arith.constant 0 : index
    %245 = vector.load %arg15[%c1_88, %c0_89, %c0_90] : memref<2x8x32xf32, #tpu.memory_space<vmem>>, vector<1x8x32xf32>
    %246 = vector.shape_cast %245 : vector<1x8x32xf32> to vector<8x32xf32>
    %c0_i32_91 = arith.constant 0 : i32
    %247 = arith.index_cast %c0_i32_91 : i32 to index
    %c0_92 = arith.constant 0 : index
    %c0_93 = arith.constant 0 : index
    %248 = vector.load %arg12[%247, %c0_92, %c0_93] : memref<8x8x128xf32, #tpu.memory_space<vmem>>, vector<1x8x128xf32>
    %249 = vector.shape_cast %248 : vector<1x8x128xf32> to vector<8x128xf32>
    %250 = arith.truncf %244 : vector<8x32xf32> to vector<8x32xbf16>
    %cst_94 = arith.constant dense<0.000000e+00> : vector<8x128xf32>
    %251 = tpu.matmul %250, %242, %cst_94 {dimension_numbers = #tpu.dot_dimension_numbers<[1], [0], [0], [1], [0, 0, 1, 1], [], []>} : vector<8x32xbf16>, vector<32x128xbf16>, vector<8x128xf32> -> vector<8x128xf32>
    %252 = arith.addf %249, %251 : vector<8x128xf32>
    %253 = vector.extract_strided_slice %252 {offsets = [0, 0], sizes = [8, 96], strides = [1, 1]} : vector<8x128xf32> to vector<8x96xf32>
    %254 = arith.negf %253 : vector<8x96xf32>
    %255 = math.exp %254 : vector<8x96xf32>
    %cst_95 = arith.constant 1.000000e+00 : f32
    %256 = vector.broadcast %cst_95 : f32 to vector<8x96xf32>
    %257 = arith.addf %256, %255 : vector<8x96xf32>
    %258 = arith.divf %256, %257 : vector<8x96xf32>
    %259 = vector.extract_strided_slice %252 {offsets = [0, 96], sizes = [8, 32], strides = [1, 1]} : vector<8x128xf32> to vector<8x32xf32>
    %260 = math.tanh %259 : vector<8x32xf32>
    %261 = vector.extract_strided_slice %258 {offsets = [0, 0], sizes = [8, 32], strides = [1, 1]} : vector<8x96xf32> to vector<8x32xf32>
    %262 = vector.extract_strided_slice %258 {offsets = [0, 32], sizes = [8, 32], strides = [1, 1]} : vector<8x96xf32> to vector<8x32xf32>
    %263 = vector.extract_strided_slice %258 {offsets = [0, 64], sizes = [8, 32], strides = [1, 1]} : vector<8x96xf32> to vector<8x32xf32>
    %264 = arith.mulf %262, %246 : vector<8x32xf32>
    %265 = arith.mulf %261, %260 : vector<8x32xf32>
    %266 = arith.addf %264, %265 : vector<8x32xf32>
    %267 = math.tanh %266 : vector<8x32xf32>
    %268 = arith.mulf %263, %267 : vector<8x32xf32>
    %269 = arith.index_cast %c0_i32_91 : i32 to index
    %c0_96 = arith.constant 0 : index
    %c0_97 = arith.constant 0 : index
    %270 = vector.load %arg9[%269, %c0_96, %c0_97] : memref<8x8x32xf32, #tpu.memory_space<vmem>>, vector<1x8x32xf32>
    %271 = vector.shape_cast %270 : vector<1x8x32xf32> to vector<8x32xf32>
    %272 = vector.shape_cast %268 : vector<8x32xf32> to vector<1x8x32xf32>
    tpu.vector_store %arg9[%269, %c0_96, %c0_97], %272 {strides = array<i32>} : memref<8x8x32xf32, #tpu.memory_space<vmem>>, vector<1x8x32xf32>,
    %c1_i32_98 = arith.constant 1 : i32
    %273 = arith.index_cast %c1_i32_98 : i32 to index
    %c0_99 = arith.constant 0 : index
    %c0_100 = arith.constant 0 : index
    %274 = vector.load %arg12[%273, %c0_99, %c0_100] : memref<8x8x128xf32, #tpu.memory_space<vmem>>, vector<1x8x128xf32>
    %275 = vector.shape_cast %274 : vector<1x8x128xf32> to vector<8x128xf32>
    %276 = arith.truncf %268 : vector<8x32xf32> to vector<8x32xbf16>
    %cst_101 = arith.constant dense<0.000000e+00> : vector<8x128xf32>
    %277 = tpu.matmul %276, %242, %cst_101 {dimension_numbers = #tpu.dot_dimension_numbers<[1], [0], [0], [1], [0, 0, 1, 1], [], []>} : vector<8x32xbf16>, vector<32x128xbf16>, vector<8x128xf32> -> vector<8x128xf32>
    %278 = arith.addf %275, %277 : vector<8x128xf32>
    %279 = vector.extract_strided_slice %278 {offsets = [0, 0], sizes = [8, 96], strides = [1, 1]} : vector<8x128xf32> to vector<8x96xf32>
    %280 = arith.negf %279 : vector<8x96xf32>
    %281 = math.exp %280 : vector<8x96xf32>
    %cst_102 = arith.constant 1.000000e+00 : f32
    %282 = vector.broadcast %cst_102 : f32 to vector<8x96xf32>
    %283 = arith.addf %282, %281 : vector<8x96xf32>
    %284 = arith.divf %282, %283 : vector<8x96xf32>
    %285 = vector.extract_strided_slice %278 {offsets = [0, 96], sizes = [8, 32], strides = [1, 1]} : vector<8x128xf32> to vector<8x32xf32>
    %286 = math.tanh %285 : vector<8x32xf32>
    %287 = vector.extract_strided_slice %284 {offsets = [0, 0], sizes = [8, 32], strides = [1, 1]} : vector<8x96xf32> to vector<8x32xf32>
    %288 = vector.extract_strided_slice %284 {offsets = [0, 32], sizes = [8, 32], strides = [1, 1]} : vector<8x96xf32> to vector<8x32xf32>
    %289 = vector.extract_strided_slice %284 {offsets = [0, 64], sizes = [8, 32], strides = [1, 1]} : vector<8x96xf32> to vector<8x32xf32>
    %290 = arith.mulf %288, %266 : vector<8x32xf32>
    %291 = arith.mulf %287, %286 : vector<8x32xf32>
    %292 = arith.addf %290, %291 : vector<8x32xf32>
    %293 = math.tanh %292 : vector<8x32xf32>
    %294 = arith.mulf %289, %293 : vector<8x32xf32>
    %295 = arith.index_cast %c1_i32_98 : i32 to index
    %c0_103 = arith.constant 0 : index
    %c0_104 = arith.constant 0 : index
    %296 = vector.load %arg9[%295, %c0_103, %c0_104] : memref<8x8x32xf32, #tpu.memory_space<vmem>>, vector<1x8x32xf32>
    %297 = vector.shape_cast %296 : vector<1x8x32xf32> to vector<8x32xf32>
    %298 = vector.shape_cast %294 : vector<8x32xf32> to vector<1x8x32xf32>
    tpu.vector_store %arg9[%295, %c0_103, %c0_104], %298 {strides = array<i32>} : memref<8x8x32xf32, #tpu.memory_space<vmem>>, vector<1x8x32xf32>,
    %c2_i32_105 = arith.constant 2 : i32
    %299 = arith.index_cast %c2_i32_105 : i32 to index
    %c0_106 = arith.constant 0 : index
    %c0_107 = arith.constant 0 : index
    %300 = vector.load %arg12[%299, %c0_106, %c0_107] : memref<8x8x128xf32, #tpu.memory_space<vmem>>, vector<1x8x128xf32>
    %301 = vector.shape_cast %300 : vector<1x8x128xf32> to vector<8x128xf32>
    %302 = arith.truncf %294 : vector<8x32xf32> to vector<8x32xbf16>
    %cst_108 = arith.constant dense<0.000000e+00> : vector<8x128xf32>
    %303 = tpu.matmul %302, %242, %cst_108 {dimension_numbers = #tpu.dot_dimension_numbers<[1], [0], [0], [1], [0, 0, 1, 1], [], []>} : vector<8x32xbf16>, vector<32x128xbf16>, vector<8x128xf32> -> vector<8x128xf32>
    %304 = arith.addf %301, %303 : vector<8x128xf32>
    %305 = vector.extract_strided_slice %304 {offsets = [0, 0], sizes = [8, 96], strides = [1, 1]} : vector<8x128xf32> to vector<8x96xf32>
    %306 = arith.negf %305 : vector<8x96xf32>
    %307 = math.exp %306 : vector<8x96xf32>
    %cst_109 = arith.constant 1.000000e+00 : f32
    %308 = vector.broadcast %cst_109 : f32 to vector<8x96xf32>
    %309 = arith.addf %308, %307 : vector<8x96xf32>
    %310 = arith.divf %308, %309 : vector<8x96xf32>
    %311 = vector.extract_strided_slice %304 {offsets = [0, 96], sizes = [8, 32], strides = [1, 1]} : vector<8x128xf32> to vector<8x32xf32>
    %312 = math.tanh %311 : vector<8x32xf32>
    %313 = vector.extract_strided_slice %310 {offsets = [0, 0], sizes = [8, 32], strides = [1, 1]} : vector<8x96xf32> to vector<8x32xf32>
    %314 = vector.extract_strided_slice %310 {offsets = [0, 32], sizes = [8, 32], strides = [1, 1]} : vector<8x96xf32> to vector<8x32xf32>
    %315 = vector.extract_strided_slice %310 {offsets = [0, 64], sizes = [8, 32], strides = [1, 1]} : vector<8x96xf32> to vector<8x32xf32>
    %316 = arith.mulf %314, %292 : vector<8x32xf32>
    %317 = arith.mulf %313, %312 : vector<8x32xf32>
    %318 = arith.addf %316, %317 : vector<8x32xf32>
    %319 = math.tanh %318 : vector<8x32xf32>
    %320 = arith.mulf %315, %319 : vector<8x32xf32>
    %321 = arith.index_cast %c2_i32_105 : i32 to index
    %c0_110 = arith.constant 0 : index
    %c0_111 = arith.constant 0 : index
    %322 = vector.load %arg9[%321, %c0_110, %c0_111] : memref<8x8x32xf32, #tpu.memory_space<vmem>>, vector<1x8x32xf32>
    %323 = vector.shape_cast %322 : vector<1x8x32xf32> to vector<8x32xf32>
    %324 = vector.shape_cast %320 : vector<8x32xf32> to vector<1x8x32xf32>
    tpu.vector_store %arg9[%321, %c0_110, %c0_111], %324 {strides = array<i32>} : memref<8x8x32xf32, #tpu.memory_space<vmem>>, vector<1x8x32xf32>,
    %c3_i32_112 = arith.constant 3 : i32
    %325 = arith.index_cast %c3_i32_112 : i32 to index
    %c0_113 = arith.constant 0 : index
    %c0_114 = arith.constant 0 : index
    %326 = vector.load %arg12[%325, %c0_113, %c0_114] : memref<8x8x128xf32, #tpu.memory_space<vmem>>, vector<1x8x128xf32>
    %327 = vector.shape_cast %326 : vector<1x8x128xf32> to vector<8x128xf32>
    %328 = arith.truncf %320 : vector<8x32xf32> to vector<8x32xbf16>
    %cst_115 = arith.constant dense<0.000000e+00> : vector<8x128xf32>
    %329 = tpu.matmul %328, %242, %cst_115 {dimension_numbers = #tpu.dot_dimension_numbers<[1], [0], [0], [1], [0, 0, 1, 1], [], []>} : vector<8x32xbf16>, vector<32x128xbf16>, vector<8x128xf32> -> vector<8x128xf32>
    %330 = arith.addf %327, %329 : vector<8x128xf32>
    %331 = vector.extract_strided_slice %330 {offsets = [0, 0], sizes = [8, 96], strides = [1, 1]} : vector<8x128xf32> to vector<8x96xf32>
    %332 = arith.negf %331 : vector<8x96xf32>
    %333 = math.exp %332 : vector<8x96xf32>
    %cst_116 = arith.constant 1.000000e+00 : f32
    %334 = vector.broadcast %cst_116 : f32 to vector<8x96xf32>
    %335 = arith.addf %334, %333 : vector<8x96xf32>
    %336 = arith.divf %334, %335 : vector<8x96xf32>
    %337 = vector.extract_strided_slice %330 {offsets = [0, 96], sizes = [8, 32], strides = [1, 1]} : vector<8x128xf32> to vector<8x32xf32>
    %338 = math.tanh %337 : vector<8x32xf32>
    %339 = vector.extract_strided_slice %336 {offsets = [0, 0], sizes = [8, 32], strides = [1, 1]} : vector<8x96xf32> to vector<8x32xf32>
    %340 = vector.extract_strided_slice %336 {offsets = [0, 32], sizes = [8, 32], strides = [1, 1]} : vector<8x96xf32> to vector<8x32xf32>
    %341 = vector.extract_strided_slice %336 {offsets = [0, 64], sizes = [8, 32], strides = [1, 1]} : vector<8x96xf32> to vector<8x32xf32>
    %342 = arith.mulf %340, %318 : vector<8x32xf32>
    %343 = arith.mulf %339, %338 : vector<8x32xf32>
    %344 = arith.addf %342, %343 : vector<8x32xf32>
    %345 = math.tanh %344 : vector<8x32xf32>
    %346 = arith.mulf %341, %345 : vector<8x32xf32>
    %347 = arith.index_cast %c3_i32_112 : i32 to index
    %c0_117 = arith.constant 0 : index
    %c0_118 = arith.constant 0 : index
    %348 = vector.load %arg9[%347, %c0_117, %c0_118] : memref<8x8x32xf32, #tpu.memory_space<vmem>>, vector<1x8x32xf32>
    %349 = vector.shape_cast %348 : vector<1x8x32xf32> to vector<8x32xf32>
    %350 = vector.shape_cast %346 : vector<8x32xf32> to vector<1x8x32xf32>
    tpu.vector_store %arg9[%347, %c0_117, %c0_118], %350 {strides = array<i32>} : memref<8x8x32xf32, #tpu.memory_space<vmem>>, vector<1x8x32xf32>,
    %c4_i32_119 = arith.constant 4 : i32
    %351 = arith.index_cast %c4_i32_119 : i32 to index
    %c0_120 = arith.constant 0 : index
    %c0_121 = arith.constant 0 : index
    %352 = vector.load %arg12[%351, %c0_120, %c0_121] : memref<8x8x128xf32, #tpu.memory_space<vmem>>, vector<1x8x128xf32>
    %353 = vector.shape_cast %352 : vector<1x8x128xf32> to vector<8x128xf32>
    %354 = arith.truncf %346 : vector<8x32xf32> to vector<8x32xbf16>
    %cst_122 = arith.constant dense<0.000000e+00> : vector<8x128xf32>
    %355 = tpu.matmul %354, %242, %cst_122 {dimension_numbers = #tpu.dot_dimension_numbers<[1], [0], [0], [1], [0, 0, 1, 1], [], []>} : vector<8x32xbf16>, vector<32x128xbf16>, vector<8x128xf32> -> vector<8x128xf32>
    %356 = arith.addf %353, %355 : vector<8x128xf32>
    %357 = vector.extract_strided_slice %356 {offsets = [0, 0], sizes = [8, 96], strides = [1, 1]} : vector<8x128xf32> to vector<8x96xf32>
    %358 = arith.negf %357 : vector<8x96xf32>
    %359 = math.exp %358 : vector<8x96xf32>
    %cst_123 = arith.constant 1.000000e+00 : f32
    %360 = vector.broadcast %cst_123 : f32 to vector<8x96xf32>
    %361 = arith.addf %360, %359 : vector<8x96xf32>
    %362 = arith.divf %360, %361 : vector<8x96xf32>
    %363 = vector.extract_strided_slice %356 {offsets = [0, 96], sizes = [8, 32], strides = [1, 1]} : vector<8x128xf32> to vector<8x32xf32>
    %364 = math.tanh %363 : vector<8x32xf32>
    %365 = vector.extract_strided_slice %362 {offsets = [0, 0], sizes = [8, 32], strides = [1, 1]} : vector<8x96xf32> to vector<8x32xf32>
    %366 = vector.extract_strided_slice %362 {offsets = [0, 32], sizes = [8, 32], strides = [1, 1]} : vector<8x96xf32> to vector<8x32xf32>
    %367 = vector.extract_strided_slice %362 {offsets = [0, 64], sizes = [8, 32], strides = [1, 1]} : vector<8x96xf32> to vector<8x32xf32>
    %368 = arith.mulf %366, %344 : vector<8x32xf32>
    %369 = arith.mulf %365, %364 : vector<8x32xf32>
    %370 = arith.addf %368, %369 : vector<8x32xf32>
    %371 = math.tanh %370 : vector<8x32xf32>
    %372 = arith.mulf %367, %371 : vector<8x32xf32>
    %373 = arith.index_cast %c4_i32_119 : i32 to index
    %c0_124 = arith.constant 0 : index
    %c0_125 = arith.constant 0 : index
    %374 = vector.load %arg9[%373, %c0_124, %c0_125] : memref<8x8x32xf32, #tpu.memory_space<vmem>>, vector<1x8x32xf32>
    %375 = vector.shape_cast %374 : vector<1x8x32xf32> to vector<8x32xf32>
    %376 = vector.shape_cast %372 : vector<8x32xf32> to vector<1x8x32xf32>
    tpu.vector_store %arg9[%373, %c0_124, %c0_125], %376 {strides = array<i32>} : memref<8x8x32xf32, #tpu.memory_space<vmem>>, vector<1x8x32xf32>,
    %c5_i32_126 = arith.constant 5 : i32
    %377 = arith.index_cast %c5_i32_126 : i32 to index
    %c0_127 = arith.constant 0 : index
    %c0_128 = arith.constant 0 : index
    %378 = vector.load %arg12[%377, %c0_127, %c0_128] : memref<8x8x128xf32, #tpu.memory_space<vmem>>, vector<1x8x128xf32>
    %379 = vector.shape_cast %378 : vector<1x8x128xf32> to vector<8x128xf32>
    %380 = arith.truncf %372 : vector<8x32xf32> to vector<8x32xbf16>
    %cst_129 = arith.constant dense<0.000000e+00> : vector<8x128xf32>
    %381 = tpu.matmul %380, %242, %cst_129 {dimension_numbers = #tpu.dot_dimension_numbers<[1], [0], [0], [1], [0, 0, 1, 1], [], []>} : vector<8x32xbf16>, vector<32x128xbf16>, vector<8x128xf32> -> vector<8x128xf32>
    %382 = arith.addf %379, %381 : vector<8x128xf32>
    %383 = vector.extract_strided_slice %382 {offsets = [0, 0], sizes = [8, 96], strides = [1, 1]} : vector<8x128xf32> to vector<8x96xf32>
    %384 = arith.negf %383 : vector<8x96xf32>
    %385 = math.exp %384 : vector<8x96xf32>
    %cst_130 = arith.constant 1.000000e+00 : f32
    %386 = vector.broadcast %cst_130 : f32 to vector<8x96xf32>
    %387 = arith.addf %386, %385 : vector<8x96xf32>
    %388 = arith.divf %386, %387 : vector<8x96xf32>
    %389 = vector.extract_strided_slice %382 {offsets = [0, 96], sizes = [8, 32], strides = [1, 1]} : vector<8x128xf32> to vector<8x32xf32>
    %390 = math.tanh %389 : vector<8x32xf32>
    %391 = vector.extract_strided_slice %388 {offsets = [0, 0], sizes = [8, 32], strides = [1, 1]} : vector<8x96xf32> to vector<8x32xf32>
    %392 = vector.extract_strided_slice %388 {offsets = [0, 32], sizes = [8, 32], strides = [1, 1]} : vector<8x96xf32> to vector<8x32xf32>
    %393 = vector.extract_strided_slice %388 {offsets = [0, 64], sizes = [8, 32], strides = [1, 1]} : vector<8x96xf32> to vector<8x32xf32>
    %394 = arith.mulf %392, %370 : vector<8x32xf32>
    %395 = arith.mulf %391, %390 : vector<8x32xf32>
    %396 = arith.addf %394, %395 : vector<8x32xf32>
    %397 = math.tanh %396 : vector<8x32xf32>
    %398 = arith.mulf %393, %397 : vector<8x32xf32>
    %399 = arith.index_cast %c5_i32_126 : i32 to index
    %c0_131 = arith.constant 0 : index
    %c0_132 = arith.constant 0 : index
    %400 = vector.load %arg9[%399, %c0_131, %c0_132] : memref<8x8x32xf32, #tpu.memory_space<vmem>>, vector<1x8x32xf32>
    %401 = vector.shape_cast %400 : vector<1x8x32xf32> to vector<8x32xf32>
    %402 = vector.shape_cast %398 : vector<8x32xf32> to vector<1x8x32xf32>
    tpu.vector_store %arg9[%399, %c0_131, %c0_132], %402 {strides = array<i32>} : memref<8x8x32xf32, #tpu.memory_space<vmem>>, vector<1x8x32xf32>,
    %c6_i32_133 = arith.constant 6 : i32
    %403 = arith.index_cast %c6_i32_133 : i32 to index
    %c0_134 = arith.constant 0 : index
    %c0_135 = arith.constant 0 : index
    %404 = vector.load %arg12[%403, %c0_134, %c0_135] : memref<8x8x128xf32, #tpu.memory_space<vmem>>, vector<1x8x128xf32>
    %405 = vector.shape_cast %404 : vector<1x8x128xf32> to vector<8x128xf32>
    %406 = arith.truncf %398 : vector<8x32xf32> to vector<8x32xbf16>
    %cst_136 = arith.constant dense<0.000000e+00> : vector<8x128xf32>
    %407 = tpu.matmul %406, %242, %cst_136 {dimension_numbers = #tpu.dot_dimension_numbers<[1], [0], [0], [1], [0, 0, 1, 1], [], []>} : vector<8x32xbf16>, vector<32x128xbf16>, vector<8x128xf32> -> vector<8x128xf32>
    %408 = arith.addf %405, %407 : vector<8x128xf32>
    %409 = vector.extract_strided_slice %408 {offsets = [0, 0], sizes = [8, 96], strides = [1, 1]} : vector<8x128xf32> to vector<8x96xf32>
    %410 = arith.negf %409 : vector<8x96xf32>
    %411 = math.exp %410 : vector<8x96xf32>
    %cst_137 = arith.constant 1.000000e+00 : f32
    %412 = vector.broadcast %cst_137 : f32 to vector<8x96xf32>
    %413 = arith.addf %412, %411 : vector<8x96xf32>
    %414 = arith.divf %412, %413 : vector<8x96xf32>
    %415 = vector.extract_strided_slice %408 {offsets = [0, 96], sizes = [8, 32], strides = [1, 1]} : vector<8x128xf32> to vector<8x32xf32>
    %416 = math.tanh %415 : vector<8x32xf32>
    %417 = vector.extract_strided_slice %414 {offsets = [0, 0], sizes = [8, 32], strides = [1, 1]} : vector<8x96xf32> to vector<8x32xf32>
    %418 = vector.extract_strided_slice %414 {offsets = [0, 32], sizes = [8, 32], strides = [1, 1]} : vector<8x96xf32> to vector<8x32xf32>
    %419 = vector.extract_strided_slice %414 {offsets = [0, 64], sizes = [8, 32], strides = [1, 1]} : vector<8x96xf32> to vector<8x32xf32>
    %420 = arith.mulf %418, %396 : vector<8x32xf32>
    %421 = arith.mulf %417, %416 : vector<8x32xf32>
    %422 = arith.addf %420, %421 : vector<8x32xf32>
    %423 = math.tanh %422 : vector<8x32xf32>
    %424 = arith.mulf %419, %423 : vector<8x32xf32>
    %425 = arith.index_cast %c6_i32_133 : i32 to index
    %c0_138 = arith.constant 0 : index
    %c0_139 = arith.constant 0 : index
    %426 = vector.load %arg9[%425, %c0_138, %c0_139] : memref<8x8x32xf32, #tpu.memory_space<vmem>>, vector<1x8x32xf32>
    %427 = vector.shape_cast %426 : vector<1x8x32xf32> to vector<8x32xf32>
    %428 = vector.shape_cast %424 : vector<8x32xf32> to vector<1x8x32xf32>
    tpu.vector_store %arg9[%425, %c0_138, %c0_139], %428 {strides = array<i32>} : memref<8x8x32xf32, #tpu.memory_space<vmem>>, vector<1x8x32xf32>,
    %c7_i32_140 = arith.constant 7 : i32
    %429 = arith.index_cast %c7_i32_140 : i32 to index
    %c0_141 = arith.constant 0 : index
    %c0_142 = arith.constant 0 : index
    %430 = vector.load %arg12[%429, %c0_141, %c0_142] : memref<8x8x128xf32, #tpu.memory_space<vmem>>, vector<1x8x128xf32>
    %431 = vector.shape_cast %430 : vector<1x8x128xf32> to vector<8x128xf32>
    %432 = arith.truncf %424 : vector<8x32xf32> to vector<8x32xbf16>
    %cst_143 = arith.constant dense<0.000000e+00> : vector<8x128xf32>
    %433 = tpu.matmul %432, %242, %cst_143 {dimension_numbers = #tpu.dot_dimension_numbers<[1], [0], [0], [1], [0, 0, 1, 1], [], []>} : vector<8x32xbf16>, vector<32x128xbf16>, vector<8x128xf32> -> vector<8x128xf32>
    %434 = arith.addf %431, %433 : vector<8x128xf32>
    %435 = vector.extract_strided_slice %434 {offsets = [0, 0], sizes = [8, 96], strides = [1, 1]} : vector<8x128xf32> to vector<8x96xf32>
    %436 = arith.negf %435 : vector<8x96xf32>
    %437 = math.exp %436 : vector<8x96xf32>
    %cst_144 = arith.constant 1.000000e+00 : f32
    %438 = vector.broadcast %cst_144 : f32 to vector<8x96xf32>
    %439 = arith.addf %438, %437 : vector<8x96xf32>
    %440 = arith.divf %438, %439 : vector<8x96xf32>
    %441 = vector.extract_strided_slice %434 {offsets = [0, 96], sizes = [8, 32], strides = [1, 1]} : vector<8x128xf32> to vector<8x32xf32>
    %442 = math.tanh %441 : vector<8x32xf32>
    %443 = vector.extract_strided_slice %440 {offsets = [0, 0], sizes = [8, 32], strides = [1, 1]} : vector<8x96xf32> to vector<8x32xf32>
    %444 = vector.extract_strided_slice %440 {offsets = [0, 32], sizes = [8, 32], strides = [1, 1]} : vector<8x96xf32> to vector<8x32xf32>
    %445 = vector.extract_strided_slice %440 {offsets = [0, 64], sizes = [8, 32], strides = [1, 1]} : vector<8x96xf32> to vector<8x32xf32>
    %446 = arith.mulf %444, %422 : vector<8x32xf32>
    %447 = arith.mulf %443, %442 : vector<8x32xf32>
    %448 = arith.addf %446, %447 : vector<8x32xf32>
    %449 = math.tanh %448 : vector<8x32xf32>
    %450 = arith.mulf %445, %449 : vector<8x32xf32>
    %451 = arith.index_cast %c7_i32_140 : i32 to index
    %c0_145 = arith.constant 0 : index
    %c0_146 = arith.constant 0 : index
    %452 = vector.load %arg9[%451, %c0_145, %c0_146] : memref<8x8x32xf32, #tpu.memory_space<vmem>>, vector<1x8x32xf32>
    %453 = vector.shape_cast %452 : vector<1x8x32xf32> to vector<8x32xf32>
    %454 = vector.shape_cast %450 : vector<8x32xf32> to vector<1x8x32xf32>
    tpu.vector_store %arg9[%451, %c0_145, %c0_146], %454 {strides = array<i32>} : memref<8x8x32xf32, #tpu.memory_space<vmem>>, vector<1x8x32xf32>,
    %c8_i32_147 = arith.constant 8 : i32
    %c1_148 = arith.constant 1 : index
    %c0_149 = arith.constant 0 : index
    %c0_150 = arith.constant 0 : index
    %455 = vector.load %arg14[%c1_148, %c0_149, %c0_150] : memref<2x8x32xf32, #tpu.memory_space<vmem>>, vector<1x8x32xf32>
    %456 = vector.shape_cast %455 : vector<1x8x32xf32> to vector<8x32xf32>
    %457 = vector.shape_cast %450 : vector<8x32xf32> to vector<1x8x32xf32>
    tpu.vector_store %arg14[%c1_148, %c0_149, %c0_150], %457 {strides = array<i32>} : memref<2x8x32xf32, #tpu.memory_space<vmem>>, vector<1x8x32xf32>,
    %c1_151 = arith.constant 1 : index
    %c0_152 = arith.constant 0 : index
    %c0_153 = arith.constant 0 : index
    %458 = vector.load %arg15[%c1_151, %c0_152, %c0_153] : memref<2x8x32xf32, #tpu.memory_space<vmem>>, vector<1x8x32xf32>
    %459 = vector.shape_cast %458 : vector<1x8x32xf32> to vector<8x32xf32>
    %460 = vector.shape_cast %448 : vector<8x32xf32> to vector<1x8x32xf32>
    tpu.vector_store %arg15[%c1_151, %c0_152, %c0_153], %460 {strides = array<i32>} : memref<2x8x32xf32, #tpu.memory_space<vmem>>, vector<1x8x32xf32>,
    %c0_i32_154 = arith.constant 0 : i32
    %461 = arith.cmpi eq, %arg1, %c0_i32_154 : i32
    %462 = arith.extui %461 : i1 to i32
    %c0_i32_155 = arith.constant 0 : i32
    %463 = arith.cmpi ne, %462, %c0_i32_155 : i32
    scf.if %463 {
      %c0_156 = arith.constant 0 : index
      %c0_157 = arith.constant 0 : index
      %c0_158 = arith.constant 0 : index
      %464 = vector.load %arg14[%c0_156, %c0_157, %c0_158] : memref<2x8x32xf32, #tpu.memory_space<vmem>>, vector<2x8x32xf32>
      %c0_159 = arith.constant 0 : index
      %c0_160 = arith.constant 0 : index
      %c0_161 = arith.constant 0 : index
      %465 = vector.load %arg10[%c0_159, %c0_160, %c0_161] : memref<2x8x32xf32, #tpu.memory_space<vmem>>, vector<2x8x32xf32>
      tpu.vector_store %arg10[%c0_159, %c0_160, %c0_161], %464 {strides = array<i32>} : memref<2x8x32xf32, #tpu.memory_space<vmem>>, vector<2x8x32xf32>,
      %c0_162 = arith.constant 0 : index
      %c0_163 = arith.constant 0 : index
      %c0_164 = arith.constant 0 : index
      %466 = vector.load %arg15[%c0_162, %c0_163, %c0_164] : memref<2x8x32xf32, #tpu.memory_space<vmem>>, vector<2x8x32xf32>
      %c0_165 = arith.constant 0 : index
      %c0_166 = arith.constant 0 : index
      %c0_167 = arith.constant 0 : index
      %467 = vector.load %arg11[%c0_165, %c0_166, %c0_167] : memref<2x8x32xf32, #tpu.memory_space<vmem>>, vector<2x8x32xf32>
      tpu.vector_store %arg11[%c0_165, %c0_166, %c0_167], %466 {strides = array<i32>} : memref<2x8x32xf32, #tpu.memory_space<vmem>>, vector<2x8x32xf32>,
    } else {
    }
    return
  }
  func.func @transform_0(%arg0: i32, %arg1: i32) -> (i32, i32, i32) {
    %c0_i32 = arith.constant 0 : i32
    %c0_i32_0 = arith.constant 0 : i32
    return %arg1, %arg0, %c0_i32 : i32, i32, i32
  }
  func.func @transform_1(%arg0: i32, %arg1: i32) -> (i32, i32) {
    %c0_i32 = arith.constant 0 : i32
    %c0_i32_0 = arith.constant 0 : i32
    %c0_i32_1 = arith.constant 0 : i32
    return %c0_i32, %c0_i32_0 : i32, i32
  }
  func.func @transform_2(%arg0: i32, %arg1: i32) -> (i32, i32) {
    %c0_i32 = arith.constant 0 : i32
    %c0_i32_0 = arith.constant 0 : i32
    %c0_i32_1 = arith.constant 0 : i32
    return %c0_i32, %c0_i32_0 : i32, i32
  }
  func.func @transform_3(%arg0: i32, %arg1: i32) -> (i32, i32) {
    %c0_i32 = arith.constant 0 : i32
    %c0_i32_0 = arith.constant 0 : i32
    %c0_i32_1 = arith.constant 0 : i32
    return %c0_i32, %c0_i32_0 : i32, i32
  }
  func.func @transform_4(%arg0: i32, %arg1: i32) -> (i32, i32) {
    %c0_i32 = arith.constant 0 : i32
    %c0_i32_0 = arith.constant 0 : i32
    %c0_i32_1 = arith.constant 0 : i32
    return %c0_i32, %c0_i32_0 : i32, i32
  }
  func.func @transform_5(%arg0: i32, %arg1: i32) -> (i32, i32) {
    %c0_i32 = arith.constant 0 : i32
    %c0_i32_0 = arith.constant 0 : i32
    %c0_i32_1 = arith.constant 0 : i32
    return %c0_i32, %c0_i32_0 : i32, i32
  }
  func.func @transform_6(%arg0: i32, %arg1: i32) -> (i32, i32) {
    %c0_i32 = arith.constant 0 : i32
    %c0_i32_0 = arith.constant 0 : i32
    %c0_i32_1 = arith.constant 0 : i32
    return %c0_i32, %c0_i32_0 : i32, i32
  }
  func.func @transform_7(%arg0: i32, %arg1: i32) -> (i32, i32, i32) {
    %c0_i32 = arith.constant 0 : i32
    %c0_i32_0 = arith.constant 0 : i32
    return %arg1, %arg0, %c0_i32 : i32, i32, i32
  }
  func.func @transform_8(%arg0: i32, %arg1: i32) -> (i32, i32, i32) {
    %c0_i32 = arith.constant 0 : i32
    %c0_i32_0 = arith.constant 0 : i32
    %c0_i32_1 = arith.constant 0 : i32
    return %c0_i32, %arg0, %c0_i32_0 : i32, i32, i32
  }
  func.func @transform_9(%arg0: i32, %arg1: i32) -> (i32, i32, i32) {
    %c0_i32 = arith.constant 0 : i32
    %c0_i32_0 = arith.constant 0 : i32
    %c0_i32_1 = arith.constant 0 : i32
    return %c0_i32, %arg0, %c0_i32_0 : i32, i32, i32
  }
}

</mosaic_0001>

<bundles_post_ra>
// kernel: lm_model_lstm_forward.3
= control target key start
LH: loop header
LB: loop body
LE: loop exit
PB: predicated region body
PF: predicated region fallthrough
CT: control target
= control target key end

     0   :  { %s225_s0 = inlined_call_operand.vmem [shape: f32[64,32], index: 0, kind: input, shape index: {}]   ;;  %s226_s1 = inlined_call_operand.vmem [shape: bf16[32,128], index: 1, kind: input, shape index: {}]   ;;  %s227_s2 = inlined_call_operand.vmem [shape: f32[1,128], index: 2, kind: input, shape index: {}]   ;;  %s228_s3 = inlined_call_operand.hbm [shape: f32[64,128], index: 3, kind: output, shape index: {}]  }
   0x1   :  { %v129_v0 = vld [vmem:[%s226_s1 + $0x8] sm:$0xff]  ;;  %v128_v1 = vld [vmem:[%s226_s1] sm:$0xff]  ;;  %v18_v4 = vld [vmem:[%s225_s0 + $0x10] sm:$0xff] }
   0x2   :  { %v16_v2 = vld [vmem:[%s225_s0] sm:$0xff]  ;;  %v17_v3 = vld [vmem:[%s225_s0 + $0x8] sm:$0xff]  ;;  %67 = vmatpush.bf16.msra.mxu0 %v129_v0  ;;  %130 = vmatpush.bf16.msra.mxu1 %v129_v0  ;;  %v19_v5 = vld [vmem:[%s225_s0 + $0x18] sm:$0xff] }
   0x3   :  { %v20_v6 = vld [vmem:[%s225_s0 + $0x20] sm:$0xff]  ;;  %v21_v7 = vld [vmem:[%s225_s0 + $0x28] sm:$0xff]  ;;  %131 = vmatpush.bf16.msra.mxu2 %v129_v0  ;;  %132 = vmatpush.bf16.msra.mxu3 %v129_v0  ;;  %v22_v8 = vld [vmem:[%s225_s0 + $0x30] sm:$0xff] }
   0x4   :  { %v23_v9 = vld [vmem:[%s225_s0 + $0x38] sm:$0xff] }
   0x5   :  { %8 = vsyncpa [#allocation3], 0  ;;  %v24_v10 = vpack.c.bf16 %v17_v3, %v16_v2  ;;  %v25_v11 = vpack.c.bf16 %v19_v5, %v18_v4  ;;  %vm48_vm0 = vcmask 261120   ;;  %v26_v12 = vpack.c.bf16 %v21_v7, %v20_v6  ;;  %v139_v14 = vld [vmem:[%s227_s2] ss:$0 sm:$0xff]  ;;  %s166_s0 = smov [#allocation2]  }
   0x6   :  { %68 = vmatpush.bf16.msra.mxu0 %v128_v1  ;;  %133 = vmatpush.bf16.msra.mxu1 %v128_v1  ;;  %v27_v13 = vpack.c.bf16 %v23_v9, %v22_v8  ;;  %s102_s2 = sshll.u32 %s166_s0, 4  ;;  %s104_s8 = sshll.u32 %s228_s3, 4  ;;  %s103_s2 = int_to_ptr.vmem [resolvable:$true] %s102_s2  ;;  %s105_s8 = int_to_ptr.hbm [resolvable:$true] %s104_s8 }
   0x7   :  { %134 = vmatpush.bf16.msra.mxu2 %v128_v1  ;;  %135 = vmatpush.bf16.msra.mxu3 %v128_v1  ;;  %s167_s9 = smov 128   ;;  %s168_s10 = smov 8  }
   0x9   :  { %124 = vmatmul.msk.bf16.vlgmr.msra.gmra.mxu0 %vm48_vm0, %v24_v10  ;;  %125 = vmatmul.msk.bf16.vlgmr.msra.gmra.mxu1 %vm48_vm0, %v25_v11 }
   0xa   :  { %126 = vmatmul.msk.bf16.vlgmr.msra.gmra.mxu2 %vm48_vm0, %v26_v12  ;;  %127 = vmatmul.msk.bf16.vlgmr.msra.gmra.mxu3 %vm48_vm0, %v27_v13 }
  0x86   :  { %v70_v15 = vpop.f32.mrf.mxu0  ;;  %v75_v16 = vpop.f32.mrf.mxu1 }
  0x87   :  { %v71_v17 = vadd.f32 %v139_v14, %v70_v15  ;;  %v76_v18 = vadd.f32 %v139_v14, %v75_v16 }
  0x89   :  { %90 = vst [vmem:[#allocation2] sm:$0xff] %v71_v17 }
  0x8a   :  { %92 = vst [vmem:[#allocation2 + $0x10] sm:$0xff] %v76_v18 }
  0x8d   :  { %v80_v19 = vpop.f32.mrf.mxu2  ;;  %v85_v20 = vpop.f32.mrf.mxu3 }
  0x8e   :  { %v81_v21 = vadd.f32 %v139_v14, %v80_v19  ;;  %v86_v22 = vadd.f32 %v139_v14, %v85_v20  ;;  %v72_v23 = vpop.f32.mrf.mxu0  ;;  %v77_v24 = vpop.f32.mrf.mxu1 }
  0x8f   :  { %v73_v25 = vadd.f32 %v139_v14, %v72_v23  ;;  %v78_v26 = vadd.f32 %v139_v14, %v77_v24 }
  0x90   :  { %94 = vst [vmem:[#allocation2 + $0x20] sm:$0xff] %v81_v21 }
  0x91   :  { %96 = vst [vmem:[#allocation2 + $0x30] sm:$0xff] %v86_v22 }
  0x92   :  { %91 = vst [vmem:[#allocation2 + $0x8] sm:$0xff] %v73_v25 }
  0x93   :  { %93 = vst [vmem:[#allocation2 + $0x18] sm:$0xff] %v78_v26 }
  0x95   :  { %v82_v27 = vpop.f32.mrf.mxu2  ;;  %v87_v28 = vpop.f32.mrf.mxu3 }
  0x96   :  { %v83_v29 = vadd.f32 %v139_v14, %v82_v27  ;;  %v88_v30 = vadd.f32 %v139_v14, %v87_v28 }
  0x98   :  { %95 = vst [vmem:[#allocation2 + $0x28] sm:$0xff] %v83_v29 }
  0x99   :  { %97 = vst [vmem:[#allocation2 + $0x38] sm:$0xff] %v88_v30 }
  0x9a   :  { %110 = dma.vmem_to_hbm [thread:$0]  %s103_s2, 1024, %s105_s8, [#allocation3], %s167_s9, %s167_s9, %s168_s10  }
  0x9b   :  { %164 = dma.done.wait [#allocation3], 1024  }
  0x9c   :  { %165 = vsyncadd [#allocation3], 4294966272 }
  0x9d   :  { %115 = vsyncpa [#allocation3], 1 }

// kernel: lm_model_lstm_forward.2
= control target key start
LH: loop header
LB: loop body
LE: loop exit
PB: predicated region body
PF: predicated region fallthrough
CT: control target
= control target key end

     0   :  { %15 = vsyncpa [#allocation7], 0  ;;  %vm36_vm0 = vcmask 261120   ;;  %v1630_v4 = vmov 0.0   ;;  %s2055_s0 = inlined_call_operand.vmem [shape: f32[8,8,32], index: 0, kind: input, shape index: {}]   ;;  %s2056_s1 = inlined_call_operand.vmem [shape: bf16[32,128], index: 1, kind: input, shape index: {}]   ;;  %s2057_s2 = inlined_call_operand.vmem [shape: bf16[32,128], index: 2, kind: input, shape index: {}]   ;;  %s2058_s3 = inlined_call_operand.vmem [shape: f32[1,128], index: 3, kind: input, shape index: {}]   ;;  %s2059_s4 = inlined_call_operand.vmem [shape: bf16[32,128], index: 4, kind: input, shape index: {}]   ;;  %s2060_s5 = inlined_call_operand.vmem [shape: bf16[32,128], index: 5, kind: input, shape index: {}]   ;;  %s2061_s6 = inlined_call_operand.vmem [shape: f32[1,128], index: 6, kind: input, shape index: {}]   ;;  %s2062_s7 = inlined_call_operand.vmem [shape: f32[8,8,32], index: 7, kind: output, shape index: {0}]   ;;  %s2063_s8 = inlined_call_operand.hbm [shape: f32[2,8,32], index: 8, kind: output, shape index: {1}]   ;;  %s2064_s9 = inlined_call_operand.hbm [shape: f32[2,8,32], index: 9, kind: output, shape index: {2}]  }
   0x1   :  { %v1432_v0 = vld [vmem:[%s2056_s1 + $0x8] sm:$0xff]  ;;  %v1431_v2 = vld [vmem:[%s2056_s1] sm:$0xff]  ;;  %37 = vst.msk [vmem:[#allocation4] sm:$0xff] %vm36_vm0, %v1630_v4 }
   0x2   :  { %v1694_v1 = vld [vmem:[%s2057_s2 + $0x8] sm:$0xff]  ;;  %v1702_v3 = vld [vmem:[%s2057_s2] sm:$0xff]  ;;  %92 = vmatpush.bf16.msra.mxu0 %v1432_v0  ;;  %38 = vst.msk [vmem:[#allocation4 + $0x8] sm:$0xff] %vm36_vm0, %v1630_v4 }
   0x3   :  { %152 = vmatpush.bf16.msra.mxu1 %v1694_v1  ;;  %v41_v5 = vld [vmem:[%s2055_s0] sm:$0xff]  ;;  %v42_v6 = vld [vmem:[%s2055_s0 + $0x8] sm:$0xff]  ;;  %39 = vst.msk [vmem:[#allocation5] sm:$0xff] %vm36_vm0, %v1630_v4  ;;  %221 = vmatpush.bf16.msra.mxu2 %v1694_v1 }
   0x4   :  { %287 = vmatpush.bf16.msra.mxu3 %v1694_v1 }
   0x5   :  { %16 = vsyncpa [#allocation9], 0  ;;  %40 = vst.msk [vmem:[#allocation5 + $0x8] sm:$0xff] %vm36_vm0, %v1630_v4  ;;  %v49_v7 = vpack.c.bf16 %v42_v6, %v41_v5  ;;  %v1733_v10 = vld [vmem:[%s2058_s3] ss:$0 sm:$0xff]  ;;  %s1631_s21 = smov 32  }
   0x6   :  { %93 = vmatpush.bf16.msra.mxu0 %v1431_v2  ;;  %s1632_s22 = smov 64   ;;  %v44_v4 = vld [vmem:[%s2055_s0 + $0x18] sm:$0xff]  ;;  %s1634_s28 = smov [#allocation8]  }
   0x7   :  { %153 = vmatpush.bf16.msra.mxu1 %v1702_v3  ;;  %222 = vmatpush.bf16.msra.mxu2 %v1702_v3  ;;  %s1333_s10 = sshll.u32 %s2064_s9, 4  ;;  %s1635_s13 = smov 128   ;;  %s1334_s10 = int_to_ptr.hbm [resolvable:$true] %s1333_s10 }
   0x8   :  { %288 = vmatpush.bf16.msra.mxu3 %v1702_v3  ;;  %v127_v8 = vld [vmem:[#allocation4] sm:$0xff]  ;;  %s1637_s17 = smov [#allocation6]   ;;  %s1320_s20 = sshll.u32 %s2063_s8, 4  ;;  %s1321_s20 = int_to_ptr.hbm [resolvable:$true] %s1320_s20 }
   0x9   :  { %1360 = vmatmul.msk.bf16.vlgmr.msra.gmra.mxu0 %vm36_vm0, %v49_v7  ;;  %v130_v9 = vpack.c.bf16 %v127_v8, %v127_v8  ;;  %s1318_s18 = sshll.u32 %s1637_s17, 4  ;;  %s1319_s18 = int_to_ptr.vmem [resolvable:$true] %s1318_s18 }
   0xa   :  { %v128_v17 = vld [vmem:[#allocation5] sm:$0xff] }
   0xb   :  { %353 = vmatpush.bf16.msrb.mxu1 %v1694_v1  ;;  %419 = vmatpush.bf16.msrb.mxu2 %v1694_v1 }
   0xc   :  { %485 = vmatpush.bf16.msrb.mxu3 %v1694_v1  ;;  %1372 = vmatmul.msk.bf16.vlgmr.msra.gmra.mxu1 %vm36_vm0, %v130_v9 }
   0xf   :  { %354 = vmatpush.bf16.msrb.mxu1 %v1702_v3  ;;  %420 = vmatpush.bf16.msrb.mxu2 %v1702_v3 }
  0x10   :  { %486 = vmatpush.bf16.msrb.mxu3 %v1702_v3 }
  0x13   :  { %551 = vmatpush.bf16.msra.mxu1 %v1694_v1 }
  0x17   :  { %552 = vmatpush.bf16.msra.mxu1 %v1702_v3 }
  0x86   :  { %v95_v11 = vpop.f32.mrf.mxu0 }
  0x87   :  { %v96_v12 = vadd.f32 %v1733_v10, %v95_v11 }
  0x89   :  { %v155_v13 = vpop.f32.mrf.mxu1 }
  0x8a   :  { %v159_v14 = vadd.f32 %v155_v13, %v96_v12 }
  0x8c   :  { %1449 = vtanh.f32 %v159_v14  ;;  %v1373_v18 = vmul.f32 -1.442695, %v159_v14 }
  0x8e   :  { %1451 = vpow2.f32 %v1373_v18  ;;  %v97_v42 = vpop.f32.mrf.mxu0 }
  0x8f   :  { %v98_v43 = vadd.f32 %v1733_v10, %v97_v42 }
  0x91   :  { %v157_v15 = vpop.f32.mrf.mxu1 }
  0x92   :  { %v1450_v16 = vpop.eup %1449 }
  0x93   :  { %186 = vrot.lane.b32.xlu0 %v1450_v16, %s1631_s21 }
  0x94   :  { %v1452_v19 = vpop.eup %1451 }
  0x95   :  { %v163_v20 = vadd.f32 1.0, %v1452_v19 }
  0x97   :  { %1453 = vrcp.f32 %v163_v20  ;;  %v175_v26 = vand.u32 2147483648, %v163_v20  ;;  %vm169_vm2 = vweird.f32 %v163_v20  ;;  %v173_v27 = vand.u32 2147483647, %v163_v20 }
  0x99   :  { %v176_v29 = vor.u32 1.1754944e-38, %v175_v26  ;;  %vm174_vm4 = vcmp.eq.f32.partialorder %v173_v27, 8.507059e+37 }
  0x9b   :  { %181 = vrot.lane.b32.xlu0 %v128_v17, %s1631_s21 }
  0x9d   :  { %v1454_v21 = vpop.eup %1453 }
  0x9e   :  { %v165_v22 = vmul.f32 %v1454_v21, %v163_v20  ;;  %vm170_vm1 = vweird.f32 %v1454_v21 }
  0x9f   :  { %vm171_vm3 = vmor %vm169_vm2, %vm170_vm1 }
  0xa0   :  { %v166_v23 = vsub.f32 1.0, %v165_v22 }
  0xa2   :  { %v167_v24 = vmul.f32 %v1454_v21, %v166_v23 }
  0xa4   :  { %v168_v25 = vadd.f32 %v1454_v21, %v167_v24 }
  0xa6   :  { %v172_v28 = vsel %vm171_vm3, %v1454_v21, %v168_v25 }
  0xa7   :  { %v177_v31 = vsel %vm174_vm4, %v176_v29, %v172_v28 }
 0x105   :  { %v187_v30 = vpop.permute.xlu0 %186 }
 0x106   :  { %v189_v32 = vmul.f32 %v187_v30, %v177_v31 }
 0x108   :  { %191 = vrot.lane.b32.xlu1 %v189_v32, %s1631_s21 }
 0x10d   :  { %v182_v33 = vpop.permute.xlu0 %181 }
 0x10e   :  { %v184_v34 = vmul.f32 %v182_v33, %v177_v31 }
 0x17a   :  { %v192_v35 = vpop.permute.xlu1 %191 }
 0x17b   :  { %v194_v36 = vadd.f32 %v192_v35, %v184_v34 }
 0x17d   :  { %1455 = vtanh.f32 %v194_v36 }
 0x183   :  { %v1456_v37 = vpop.eup %1455 }
 0x184   :  { %197 = vrot.lane.b32.xlu1 %v1456_v37, %s1631_s21 }
 0x1f6   :  { %v198_v38 = vpop.permute.xlu1 %197 }
 0x1f7   :  { %v1740_v39 = vmul.f32 %v198_v38, %v177_v31 }
 0x1f9   :  { %v208_v40 = vpack.c.bf16 %v1740_v39, %v1740_v39 }
 0x1fb   :  { %210 = vrot.lane.b32.xlu2 %v208_v40, %s1632_s22 }
 0x255   :  { %v211_v41 = vpop.permute.xlu2 %210 }
 0x256   :  { %1374 = vmatmul.msk.bf16.vlgmr.msra.gmra.mxu2 %vm36_vm0, %v211_v41 }
 0x257   :  { %617 = vmatpush.bf16.msra.mxu2 %v1694_v1 }
 0x25b   :  { %618 = vmatpush.bf16.msra.mxu2 %v1702_v3  ;;  %v43_v3 = vld [vmem:[%s2055_s0 + $0x10] sm:$0xff] }
 0x25c   :  { %v50_v5 = vpack.c.bf16 %v44_v4, %v43_v3  ;;  %v46_v3 = vld [vmem:[%s2055_s0 + $0x28] sm:$0xff] }
 0x25e   :  { %1361 = vmatmul.msk.bf16.gmra.mxu0 %vm36_vm0, %v50_v5 }
 0x2d9   :  { %v224_v44 = vpop.f32.mrf.mxu2 }
 0x2da   :  { %v228_v45 = vadd.f32 %v224_v44, %v98_v43 }
 0x2db   :  { %v100_v11 = vpop.f32.mrf.mxu0 }
 0x2dc   :  { %1457 = vtanh.f32 %v228_v45  ;;  %v1375_v48 = vmul.f32 -1.442695, %v228_v45  ;;  %v101_v12 = vadd.f32 %v1733_v10, %v100_v11 }
 0x2de   :  { %1459 = vpow2.f32 %v1375_v48 }
 0x2e1   :  { %v226_v46 = vpop.f32.mrf.mxu2 }
 0x2e2   :  { %v1458_v47 = vpop.eup %1457 }
 0x2e3   :  { %251 = vrot.lane.b32.xlu2 %v1458_v47, %s1631_s21  ;;  %v102_v41 = vpop.f32.mrf.mxu0 }
 0x2e4   :  { %v1460_v49 = vpop.eup %1459  ;;  %v103_v42 = vadd.f32 %v1733_v10, %v102_v41 }
 0x2e5   :  { %v232_v50 = vadd.f32 1.0, %v1460_v49 }
 0x2e7   :  { %1461 = vrcp.f32 %v232_v50  ;;  %v244_v56 = vand.u32 2147483648, %v232_v50  ;;  %vm238_vm6 = vweird.f32 %v232_v50  ;;  %v242_v57 = vand.u32 2147483647, %v232_v50 }
 0x2e9   :  { %v245_v59 = vor.u32 1.1754944e-38, %v244_v56  ;;  %vm243_vm8 = vcmp.eq.f32.partialorder %v242_v57, 8.507059e+37 }
 0x2ed   :  { %v1462_v51 = vpop.eup %1461 }
 0x2ee   :  { %v234_v52 = vmul.f32 %v1462_v51, %v232_v50  ;;  %vm239_vm5 = vweird.f32 %v1462_v51 }
 0x2ef   :  { %vm240_vm7 = vmor %vm238_vm6, %vm239_vm5 }
 0x2f0   :  { %v235_v53 = vsub.f32 1.0, %v234_v52 }
 0x2f2   :  { %v236_v54 = vmul.f32 %v1462_v51, %v235_v53 }
 0x2f4   :  { %v237_v55 = vadd.f32 %v1462_v51, %v236_v54 }
 0x2f6   :  { %v241_v58 = vsel %vm240_vm7, %v1462_v51, %v237_v55 }
 0x2f7   :  { %v246_v61 = vsel %vm243_vm8, %v245_v59, %v241_v58 }
 0x2f8   :  { %v249_v63 = vmul.f32 %v246_v61, %v194_v36 }
 0x33d   :  { %v252_v60 = vpop.permute.xlu2 %251 }
 0x33e   :  { %v254_v62 = vmul.f32 %v252_v60, %v246_v61 }
 0x340   :  { %256 = vrot.lane.b32.xlu0 %v254_v62, %s1631_s21 }
 0x3b2   :  { %v257_v0 = vpop.permute.xlu0 %256 }
 0x3b3   :  { %v259_v1 = vadd.f32 %v257_v0, %v249_v63 }
 0x3b5   :  { %1463 = vtanh.f32 %v259_v1 }
 0x3bb   :  { %v1464_v2 = vpop.eup %1463 }
 0x3bc   :  { %262 = vrot.lane.b32.xlu1 %v1464_v2, %s1631_s21  ;;  %v45_v2 = vld [vmem:[%s2055_s0 + $0x20] sm:$0xff] }
 0x3bd   :  { %v51_v4 = vpack.c.bf16 %v46_v3, %v45_v2 }
 0x3bf   :  { %1362 = vmatmul.msk.bf16.gmra.mxu0 %vm36_vm0, %v51_v4 }
 0x42e   :  { %v263_v6 = vpop.permute.xlu1 %262 }
 0x42f   :  { %v1759_v7 = vmul.f32 %v263_v6, %v246_v61 }
 0x431   :  { %v274_v8 = vpack.c.bf16 %v1759_v7, %v1759_v7 }
 0x433   :  { %276 = vrot.lane.b32.xlu2 %v274_v8, %s1632_s22 }
 0x43c   :  { %v105_v11 = vpop.f32.mrf.mxu0 }
 0x48d   :  { %v277_v9 = vpop.permute.xlu2 %276 }
 0x48e   :  { %1376 = vmatmul.msk.bf16.vlgmr.msra.gmra.mxu3 %vm36_vm0, %v277_v9 }
 0x511   :  { %v290_v13 = vpop.f32.mrf.mxu3 }
 0x512   :  { %v294_v14 = vadd.f32 %v290_v13, %v101_v12  ;;  %v106_v12 = vadd.f32 %v1733_v10, %v105_v11 }
 0x514   :  { %1465 = vtanh.f32 %v294_v14  ;;  %v1377_v17 = vmul.f32 -1.442695, %v294_v14 }
 0x516   :  { %1467 = vpow2.f32 %v1377_v17 }
 0x519   :  { %v292_v15 = vpop.f32.mrf.mxu3 }
 0x51a   :  { %v1466_v16 = vpop.eup %1465 }
 0x51b   :  { %317 = vrot.lane.b32.xlu0 %v1466_v16, %s1631_s21 }
 0x51c   :  { %v1468_v18 = vpop.eup %1467 }
 0x51d   :  { %v298_v19 = vadd.f32 1.0, %v1468_v18 }
 0x51f   :  { %1469 = vrcp.f32 %v298_v19  ;;  %v310_v25 = vand.u32 2147483648, %v298_v19  ;;  %vm304_vm10 = vweird.f32 %v298_v19  ;;  %v308_v26 = vand.u32 2147483647, %v298_v19 }
 0x521   :  { %v311_v28 = vor.u32 1.1754944e-38, %v310_v25  ;;  %vm309_vm12 = vcmp.eq.f32.partialorder %v308_v26, 8.507059e+37 }
 0x525   :  { %v1470_v20 = vpop.eup %1469 }
 0x526   :  { %v300_v21 = vmul.f32 %v1470_v20, %v298_v19  ;;  %vm305_vm9 = vweird.f32 %v1470_v20 }
 0x527   :  { %vm306_vm11 = vmor %vm304_vm10, %vm305_vm9 }
 0x528   :  { %v301_v22 = vsub.f32 1.0, %v300_v21 }
 0x52a   :  { %v302_v23 = vmul.f32 %v1470_v20, %v301_v22 }
 0x52c   :  { %v303_v24 = vadd.f32 %v1470_v20, %v302_v23 }
 0x52e   :  { %v307_v27 = vsel %vm306_vm11, %v1470_v20, %v303_v24 }
 0x52f   :  { %v312_v30 = vsel %vm309_vm12, %v311_v28, %v307_v27 }
 0x530   :  { %v315_v32 = vmul.f32 %v312_v30, %v259_v1 }
 0x58d   :  { %v318_v29 = vpop.permute.xlu0 %317 }
 0x58e   :  { %v320_v31 = vmul.f32 %v318_v29, %v312_v30 }
 0x590   :  { %322 = vrot.lane.b32.xlu1 %v320_v31, %s1631_s21 }
 0x602   :  { %v323_v33 = vpop.permute.xlu1 %322 }
 0x603   :  { %v325_v34 = vadd.f32 %v323_v33, %v315_v32 }
 0x605   :  { %1471 = vtanh.f32 %v325_v34 }
 0x60b   :  { %v1472_v35 = vpop.eup %1471 }
 0x60c   :  { %328 = vrot.lane.b32.xlu2 %v1472_v35, %s1631_s21 }
 0x666   :  { %v329_v36 = vpop.permute.xlu2 %328 }
 0x667   :  { %v1769_v37 = vmul.f32 %v329_v36, %v312_v30 }
 0x669   :  { %v340_v38 = vpack.c.bf16 %v1769_v37, %v1769_v37 }
 0x66b   :  { %342 = vrot.lane.b32.xlu0 %v340_v38, %s1632_s22 }
 0x6dd   :  { %v343_v40 = vpop.permute.xlu0 %342 }
 0x6de   :  { %1378 = vmatmul.msk.bf16.vlgmr.msrb.gmra.mxu1 %vm36_vm0, %v343_v40 }
 0x75b   :  { %v356_v43 = vpop.f32.mrf.mxu1 }
 0x75c   :  { %v360_v44 = vadd.f32 %v356_v43, %v103_v42  ;;  %v107_v42 = vpop.f32.mrf.mxu0 }
 0x75d   :  { %v108_v43 = vadd.f32 %v1733_v10, %v107_v42 }
 0x75e   :  { %1473 = vtanh.f32 %v360_v44  ;;  %v1379_v47 = vmul.f32 -1.442695, %v360_v44 }
 0x760   :  { %1475 = vpow2.f32 %v1379_v47 }
 0x763   :  { %v358_v45 = vpop.f32.mrf.mxu1 }
 0x764   :  { %v1474_v46 = vpop.eup %1473 }
 0x765   :  { %383 = vrot.lane.b32.xlu1 %v1474_v46, %s1631_s21 }
 0x766   :  { %v1476_v48 = vpop.eup %1475 }
 0x767   :  { %v364_v49 = vadd.f32 1.0, %v1476_v48 }
 0x769   :  { %1477 = vrcp.f32 %v364_v49  ;;  %v376_v55 = vand.u32 2147483648, %v364_v49  ;;  %vm370_vm14 = vweird.f32 %v364_v49  ;;  %v374_v56 = vand.u32 2147483647, %v364_v49 }
 0x76b   :  { %v377_v58 = vor.u32 1.1754944e-38, %v376_v55  ;;  %vm375_vm1 = vcmp.eq.f32.partialorder %v374_v56, 8.507059e+37 }
 0x76f   :  { %v1478_v50 = vpop.eup %1477 }
 0x770   :  { %v366_v51 = vmul.f32 %v1478_v50, %v364_v49  ;;  %vm371_vm13 = vweird.f32 %v1478_v50 }
 0x771   :  { %vm372_vm15 = vmor %vm370_vm14, %vm371_vm13 }
 0x772   :  { %v367_v52 = vsub.f32 1.0, %v366_v51 }
 0x774   :  { %v368_v53 = vmul.f32 %v1478_v50, %v367_v52 }
 0x776   :  { %v369_v54 = vadd.f32 %v1478_v50, %v368_v53 }
 0x778   :  { %v373_v57 = vsel %vm372_vm15, %v1478_v50, %v369_v54 }
 0x779   :  { %v378_v60 = vsel %vm375_vm1, %v377_v58, %v373_v57 }
 0x77a   :  { %v381_v62 = vmul.f32 %v378_v60, %v325_v34 }
 0x7d7   :  { %v384_v59 = vpop.permute.xlu1 %383 }
 0x7d8   :  { %v386_v61 = vmul.f32 %v384_v59, %v378_v60 }
 0x7da   :  { %388 = vrot.lane.b32.xlu2 %v386_v61, %s1631_s21 }
 0x834   :  { %v389_v63 = vpop.permute.xlu2 %388 }
 0x835   :  { %v391_v0 = vadd.f32 %v389_v63, %v381_v62  ;;  %v1436_v63 = vld [vmem:[%s2059_s4 + $0x8] sm:$0xff] }
 0x836   :  { %724 = vmatpush.bf16.msra.mxu3 %v1436_v63 }
 0x837   :  { %1479 = vtanh.f32 %v391_v0 }
 0x83d   :  { %v1480_v1 = vpop.eup %1479 }
 0x83e   :  { %394 = vrot.lane.b32.xlu0 %v1480_v1, %s1631_s21 }
 0x8b0   :  { %v395_v5 = vpop.permute.xlu0 %394 }
 0x8b1   :  { %v1786_v6 = vmul.f32 %v395_v5, %v378_v60 }
 0x8b3   :  { %v406_v8 = vpack.c.bf16 %v1786_v6, %v1786_v6 }
 0x8b5   :  { %408 = vrot.lane.b32.xlu1 %v406_v8, %s1632_s22 }
 0x927   :  { %v409_v9 = vpop.permute.xlu1 %408 }
 0x928   :  { %1380 = vmatmul.msk.bf16.vlgmr.msrb.gmra.mxu2 %vm36_vm0, %v409_v9 }
 0x9ab   :  { %v422_v13 = vpop.f32.mrf.mxu2 }
 0x9ac   :  { %v426_v14 = vadd.f32 %v422_v13, %v106_v12 }
 0x9ae   :  { %1481 = vtanh.f32 %v426_v14  ;;  %v1381_v17 = vmul.f32 -1.442695, %v426_v14  ;;  %v47_v14 = vld [vmem:[%s2055_s0 + $0x30] sm:$0xff] }
 0x9b0   :  { %1483 = vpow2.f32 %v1381_v17  ;;  %v1837_v17 = vld [vmem:[%s2060_s5 + $0x8] sm:$0xff] }
 0x9b1   :  { %786 = vmatpush.bf16.msrb.mxu1 %v1837_v17  ;;  %854 = vmatpush.bf16.msrb.mxu2 %v1837_v17 }
 0x9b2   :  { %919 = vmatpush.bf16.msrb.mxu0 %v1837_v17 }
 0x9b3   :  { %v424_v15 = vpop.f32.mrf.mxu2 }
 0x9b4   :  { %v1482_v16 = vpop.eup %1481  ;;  %v48_v15 = vld [vmem:[%s2055_s0 + $0x38] sm:$0xff] }
 0x9b5   :  { %449 = vrot.lane.b32.xlu2 %v1482_v16, %s1631_s21  ;;  %v52_v16 = vpack.c.bf16 %v48_v15, %v47_v14 }
 0x9b6   :  { %v1484_v18 = vpop.eup %1483 }
 0x9b7   :  { %v430_v19 = vadd.f32 1.0, %v1484_v18  ;;  %1363 = vmatmul.msk.bf16.gmra.mxu0 %vm36_vm0, %v52_v16  ;;  %v1843_v18 = vld [vmem:[%s2060_s5] sm:$0xff] }
 0x9b8   :  { %787 = vmatpush.bf16.msrb.mxu1 %v1843_v18  ;;  %855 = vmatpush.bf16.msrb.mxu2 %v1843_v18 }
 0x9b9   :  { %1485 = vrcp.f32 %v430_v19  ;;  %v442_v25 = vand.u32 2147483648, %v430_v19  ;;  %vm436_vm3 = vweird.f32 %v430_v19  ;;  %v440_v26 = vand.u32 2147483647, %v430_v19  ;;  %920 = vmatpush.bf16.msrb.mxu0 %v1843_v18 }
 0x9bb   :  { %v443_v28 = vor.u32 1.1754944e-38, %v442_v25  ;;  %vm441_vm5 = vcmp.eq.f32.partialorder %v440_v26, 8.507059e+37 }
 0x9bd   :  { %1114 = vmatpush.bf16.msra.mxu0 %v1837_v17 }
 0x9bf   :  { %v1486_v20 = vpop.eup %1485 }
 0x9c0   :  { %v432_v21 = vmul.f32 %v1486_v20, %v430_v19  ;;  %vm437_vm2 = vweird.f32 %v1486_v20 }
 0x9c1   :  { %vm438_vm4 = vmor %vm436_vm3, %vm437_vm2  ;;  %1115 = vmatpush.bf16.msra.mxu0 %v1843_v18 }
 0x9c2   :  { %v433_v22 = vsub.f32 1.0, %v432_v21 }
 0x9c4   :  { %v434_v23 = vmul.f32 %v1486_v20, %v433_v22 }
 0x9c6   :  { %v435_v24 = vadd.f32 %v1486_v20, %v434_v23 }
 0x9c8   :  { %v439_v27 = vsel %vm438_vm4, %v1486_v20, %v435_v24  ;;  %v760_v20 = vld [vmem:[#allocation4 + $0x8] sm:$0xff] }
 0x9c9   :  { %v444_v30 = vsel %vm441_vm5, %v443_v28, %v439_v27  ;;  %v764_v21 = vpack.c.bf16 %v760_v20, %v760_v20  ;;  %v1863_v28 = vld [vmem:[%s2061_s6] ss:$0 sm:$0xff] }
 0x9ca   :  { %v447_v32 = vmul.f32 %v444_v30, %v391_v0  ;;  %v1435_v0 = vld [vmem:[%s2059_s4] sm:$0xff]  ;;  %s1636_s4 = smov 8  }
 0x9cb   :  { %725 = vmatpush.bf16.msra.mxu3 %v1435_v0 }
 0xa0f   :  { %v450_v29 = vpop.permute.xlu2 %449 }
 0xa10   :  { %v452_v31 = vmul.f32 %v450_v29, %v444_v30 }
 0xa12   :  { %454 = vrot.lane.b32.xlu0 %v452_v31, %s1631_s21  ;;  %v762_v31 = vld [vmem:[#allocation5 + $0x8] sm:$0xff] }
 0xa34   :  { %v110_v22 = vpop.f32.mrf.mxu0 }
 0xa35   :  { %v111_v23 = vadd.f32 %v1733_v10, %v110_v22 }
 0xa84   :  { %v455_v33 = vpop.permute.xlu0 %454 }
 0xa85   :  { %v457_v34 = vadd.f32 %v455_v33, %v447_v32 }
 0xa87   :  { %1487 = vtanh.f32 %v457_v34 }
 0xa8d   :  { %v1488_v35 = vpop.eup %1487 }
 0xa8e   :  { %460 = vrot.lane.b32.xlu1 %v1488_v35, %s1631_s21 }
 0xb00   :  { %v461_v36 = vpop.permute.xlu1 %460 }
 0xb01   :  { %v1796_v38 = vmul.f32 %v461_v36, %v444_v30 }
 0xb03   :  { %v472_v40 = vpack.c.bf16 %v1796_v38, %v1796_v38 }
 0xb05   :  { %474 = vrot.lane.b32.xlu2 %v472_v40, %s1632_s22 }
 0xb5f   :  { %v475_v41 = vpop.permute.xlu2 %474 }
 0xb60   :  { %1382 = vmatmul.msk.bf16.vlgmr.msrb.gmra.mxu3 %vm36_vm0, %v475_v41 }
 0xbe3   :  { %v488_v44 = vpop.f32.mrf.mxu3 }
 0xbe4   :  { %v492_v45 = vadd.f32 %v488_v44, %v108_v43 }
 0xbe6   :  { %1489 = vtanh.f32 %v492_v45  ;;  %v1383_v48 = vmul.f32 -1.442695, %v492_v45 }
 0xbe8   :  { %1491 = vpow2.f32 %v1383_v48 }
 0xbeb   :  { %v490_v46 = vpop.f32.mrf.mxu3 }
 0xbec   :  { %v1490_v47 = vpop.eup %1489 }
 0xbed   :  { %515 = vrot.lane.b32.xlu0 %v1490_v47, %s1631_s21 }
 0xbee   :  { %v1492_v49 = vpop.eup %1491 }
 0xbef   :  { %v496_v50 = vadd.f32 1.0, %v1492_v49 }
 0xbf1   :  { %1493 = vrcp.f32 %v496_v50  ;;  %v508_v56 = vand.u32 2147483648, %v496_v50  ;;  %vm502_vm7 = vweird.f32 %v496_v50  ;;  %v506_v57 = vand.u32 2147483647, %v496_v50 }
 0xbf3   :  { %v509_v59 = vor.u32 1.1754944e-38, %v508_v56  ;;  %vm507_vm9 = vcmp.eq.f32.partialorder %v506_v57, 8.507059e+37 }
 0xbf5   :  { %202 = vrot.lane.b32.xlu0 %v1740_v39, %s1632_s22 }
 0xbf7   :  { %v1494_v51 = vpop.eup %1493 }
 0xbf8   :  { %v498_v52 = vmul.f32 %v1494_v51, %v496_v50  ;;  %vm503_vm6 = vweird.f32 %v1494_v51 }
 0xbf9   :  { %vm504_vm8 = vmor %vm502_vm7, %vm503_vm6 }
 0xbfa   :  { %v499_v53 = vsub.f32 1.0, %v498_v52 }
 0xbfc   :  { %v500_v54 = vmul.f32 %v1494_v51, %v499_v53 }
 0xbfe   :  { %v501_v55 = vadd.f32 %v1494_v51, %v500_v54 }
 0xc00   :  { %v505_v58 = vsel %vm504_vm8, %v1494_v51, %v501_v55 }
 0xc01   :  { %v510_v39 = vsel %vm507_vm9, %v509_v59, %v505_v58 }
 0xc02   :  { %v513_v1 = vmul.f32 %v510_v39, %v457_v34 }
 0xc5f   :  { %v516_v60 = vpop.permute.xlu0 %515 }
 0xc60   :  { %v518_v61 = vmul.f32 %v516_v60, %v510_v39 }
 0xc62   :  { %520 = vrot.lane.b32.xlu1 %v518_v61, %s1631_s21 }
 0xc67   :  { %v203_v62 = vpop.permute.xlu0 %202 }
 0xc68   :  { %205 = vst.msk [vmem:[#allocation3] sm:$0xff] %vm36_vm0, %v203_v62 }
 0xc6a   :  { %267 = vrot.lane.b32.xlu1 %v1759_v7, %s1632_s22 }
 0xc6f   :  { %v674_v7 = vld [vmem:[#allocation3] sm:$0xff] }
 0xcd4   :  { %v521_v2 = vpop.permute.xlu1 %520 }
 0xcd5   :  { %v1816_v3 = vadd.f32 %v521_v2, %v513_v1 }
 0xcd7   :  { %1495 = vtanh.f32 %v1816_v3 }
 0xcdc   :  { %v268_v4 = vpop.permute.xlu1 %267 }
 0xcdd   :  { %v1496_v5 = vpop.eup %1495  ;;  %271 = vst.msk [vmem:[#allocation3 + $0x8] sm:$0xff] %vm36_vm0, %v268_v4 }
 0xcde   :  { %526 = vrot.lane.b32.xlu2 %v1496_v5, %s1631_s21 }
 0xce4   :  { %v675_v8 = vld [vmem:[#allocation3 + $0x8] sm:$0xff] }
 0xce5   :  { %v682_v9 = vpack.c.bf16 %v675_v8, %v674_v7 }
 0xce7   :  { %1396 = vmatmul.msk.bf16.vlgmr.msra.gmra.mxu3 %vm36_vm0, %v682_v9 }
 0xd38   :  { %v527_v11 = vpop.permute.xlu2 %526 }
 0xd39   :  { %v1822_v12 = vmul.f32 %v527_v11, %v510_v39 }
 0xd3b   :  { %v538_v13 = vpack.c.bf16 %v1822_v12, %v1822_v12 }
 0xd3d   :  { %540 = vrot.lane.b32.xlu2 %v538_v13, %s1632_s22 }
 0xd6a   :  { %v727_v29 = vpop.f32.mrf.mxu3 }
 0xd6b   :  { %v728_v30 = vadd.f32 %v1863_v28, %v727_v29 }
 0xd97   :  { %v541_v19 = vpop.permute.xlu2 %540 }
 0xd98   :  { %1384 = vmatmul.msk.bf16.vlgmr.msra.gmra.mxu1 %vm36_vm0, %v541_v19 }
 0xd99   :  { %984 = vmatpush.bf16.msra.mxu1 %v1837_v17 }
 0xd9d   :  { %985 = vmatpush.bf16.msra.mxu1 %v1843_v18 }
 0xda8   :  { %1408 = vmatmul.msk.bf16.vlgmr.msrb.gmra.mxu1 %vm36_vm0, %v764_v21 }
 0xda9   :  { %1179 = vmatpush.bf16.msrb.mxu1 %v1837_v17 }
 0xdad   :  { %1180 = vmatpush.bf16.msrb.mxu1 %v1843_v18 }
 0xe15   :  { %v554_v24 = vpop.f32.mrf.mxu1 }
 0xe16   :  { %v558_v25 = vadd.f32 %v554_v24, %v111_v23 }
 0xe18   :  { %1497 = vtanh.f32 %v558_v25  ;;  %v1385_v35 = vmul.f32 -1.442695, %v558_v25 }
 0xe1d   :  { %v556_v26 = vpop.f32.mrf.mxu1 }
 0xe1e   :  { %v1498_v27 = vpop.eup %1497 }
 0xe1f   :  { %581 = vrot.lane.b32.xlu0 %v1498_v27, %s1631_s21  ;;  %v729_v27 = vpop.f32.mrf.mxu3 }
 0xe20   :  { %v730_v29 = vadd.f32 %v1863_v28, %v729_v27 }
 0xe25   :  { %v789_v32 = vpop.f32.mrf.mxu1 }
 0xe26   :  { %v793_v33 = vadd.f32 %v789_v32, %v728_v30 }
 0xe27   :  { %815 = vrot.lane.b32.xlu0 %v762_v31, %s1631_s21 }
 0xe28   :  { %1499 = vtanh.f32 %v793_v33  ;;  %v1409_v41 = vmul.f32 -1.442695, %v793_v33 }
 0xe29   :  { %1501 = vpow2.f32 %v1385_v35 }
 0xe2d   :  { %v791_v10 = vpop.f32.mrf.mxu1 }
 0xe2e   :  { %v1500_v34 = vpop.eup %1499 }
 0xe2f   :  { %820 = vrot.lane.b32.xlu1 %v1500_v34, %s1631_s21  ;;  %v1502_v36 = vpop.eup %1501 }
 0xe30   :  { %v562_v40 = vadd.f32 1.0, %v1502_v36 }
 0xe32   :  { %1503 = vrcp.f32 %v562_v40  ;;  %v574_v50 = vand.u32 2147483648, %v562_v40  ;;  %vm568_vm11 = vweird.f32 %v562_v40  ;;  %v572_v51 = vand.u32 2147483647, %v562_v40 }
 0xe33   :  { %1505 = vpow2.f32 %v1409_v41 }
 0xe34   :  { %v575_v54 = vor.u32 1.1754944e-38, %v574_v50  ;;  %vm573_vm13 = vcmp.eq.f32.partialorder %v572_v51, 8.507059e+37 }
 0xe38   :  { %v1504_v42 = vpop.eup %1503 }
 0xe39   :  { %v1506_v43 = vpop.eup %1505  ;;  %v564_v44 = vmul.f32 %v1504_v42, %v562_v40  ;;  %vm569_vm10 = vweird.f32 %v1504_v42 }
 0xe3a   :  { %v797_v45 = vadd.f32 1.0, %v1506_v43  ;;  %vm570_vm12 = vmor %vm568_vm11, %vm569_vm10 }
 0xe3b   :  { %v565_v46 = vsub.f32 1.0, %v564_v44 }
 0xe3c   :  { %1507 = vrcp.f32 %v797_v45  ;;  %v809_v39 = vand.u32 2147483648, %v797_v45  ;;  %vm803_vm15 = vweird.f32 %v797_v45  ;;  %v807_v61 = vand.u32 2147483647, %v797_v45 }
 0xe3d   :  { %v566_v47 = vmul.f32 %v1504_v42, %v565_v46 }
 0xe3e   :  { %v810_v63 = vor.u32 1.1754944e-38, %v809_v39  ;;  %vm808_vm2 = vcmp.eq.f32.partialorder %v807_v61, 8.507059e+37 }
 0xe3f   :  { %v567_v48 = vadd.f32 %v1504_v42, %v566_v47 }
 0xe41   :  { %v571_v52 = vsel %vm570_vm12, %v1504_v42, %v567_v48 }
 0xe42   :  { %v1508_v49 = vpop.eup %1507  ;;  %v576_v56 = vsel %vm573_vm13, %v575_v54, %v571_v52 }
 0xe43   :  { %v799_v53 = vmul.f32 %v1508_v49, %v797_v45  ;;  %vm804_vm14 = vweird.f32 %v1508_v49  ;;  %v579_v4 = vmul.f32 %v576_v56, %v1816_v3 }
 0xe44   :  { %vm805_vm1 = vmor %vm803_vm15, %vm804_vm14 }
 0xe45   :  { %v800_v58 = vsub.f32 1.0, %v799_v53 }
 0xe47   :  { %v801_v59 = vmul.f32 %v1508_v49, %v800_v58 }
 0xe49   :  { %v802_v60 = vadd.f32 %v1508_v49, %v801_v59 }
 0xe4b   :  { %v806_v62 = vsel %vm805_vm1, %v1508_v49, %v802_v60  ;;  %v1911_v60 = vpop.f32.mrf.mxu0 }
 0xe4c   :  { %v811_v0 = vsel %vm808_vm2, %v810_v63, %v806_v62 }
 0xe91   :  { %v582_v55 = vpop.permute.xlu0 %581 }
 0xe92   :  { %v584_v57 = vmul.f32 %v582_v55, %v576_v56 }
 0xe94   :  { %586 = vrot.lane.b32.xlu2 %v584_v57, %s1631_s21 }
 0xe99   :  { %v816_v9 = vpop.permute.xlu0 %815 }
 0xe9a   :  { %v818_v11 = vmul.f32 %v816_v9, %v811_v0 }
 0xea1   :  { %v821_v1 = vpop.permute.xlu1 %820 }
 0xea2   :  { %v823_v2 = vmul.f32 %v821_v1, %v811_v0 }
 0xea4   :  { %825 = vrot.lane.b32.xlu1 %v823_v2, %s1631_s21 }
 0xeee   :  { %v587_v5 = vpop.permute.xlu2 %586 }
 0xeef   :  { %v1871_v7 = vadd.f32 %v587_v5, %v579_v4 }
 0xef1   :  { %1509 = vtanh.f32 %v1871_v7 }
 0xef7   :  { %v1510_v8 = vpop.eup %1509 }
 0xef8   :  { %592 = vrot.lane.b32.xlu2 %v1510_v8, %s1631_s21 }
 0xf16   :  { %v826_v13 = vpop.permute.xlu1 %825 }
 0xf17   :  { %v828_v14 = vadd.f32 %v826_v13, %v818_v11 }
 0xf19   :  { %1511 = vtanh.f32 %v828_v14 }
 0xf1f   :  { %v1512_v15 = vpop.eup %1511 }
 0xf20   :  { %831 = vrot.lane.b32.xlu0 %v1512_v15, %s1631_s21 }
 0xf52   :  { %v593_v16 = vpop.permute.xlu2 %592 }
 0xf53   :  { %v1876_v19 = vmul.f32 %v593_v16, %v576_v56 }
 0xf55   :  { %v604_v3 = vpack.c.bf16 %v1876_v19, %v1876_v19 }
 0xf57   :  { %606 = vrot.lane.b32.xlu1 %v604_v3, %s1632_s22 }
 0xf92   :  { %v832_v20 = vpop.permute.xlu0 %831 }
 0xf93   :  { %v1881_v21 = vmul.f32 %v832_v20, %v811_v0 }
 0xf95   :  { %v841_v22 = vpack.c.bf16 %v1881_v21, %v1881_v21 }
 0xf97   :  { %843 = vrot.lane.b32.xlu2 %v841_v22, %s1632_s22 }
 0xfc9   :  { %v607_v23 = vpop.permute.xlu1 %606 }
 0xfca   :  { %1386 = vmatmul.msk.bf16.vlgmr.msra.gmra.mxu2 %vm36_vm0, %v607_v23 }
 0xfcb   :  { %1049 = vmatpush.bf16.msra.mxu2 %v1837_v17 }
 0xfcf   :  { %1050 = vmatpush.bf16.msra.mxu2 %v1843_v18 }
 0xff1   :  { %v844_v24 = vpop.permute.xlu2 %843 }
 0xff2   :  { %1410 = vmatmul.msk.bf16.vlgmr.msrb.gmra.mxu2 %vm36_vm0, %v844_v24 }
 0xff3   :  { %1244 = vmatpush.bf16.msrb.mxu2 %v1837_v17 }
 0xff7   :  { %1245 = vmatpush.bf16.msrb.mxu2 %v1843_v18 }
0x104d   :  { %v1892_v25 = vpop.f32.mrf.mxu2 }
0x1055   :  { %v622_v26 = vpop.f32.mrf.mxu2 }
0x1075   :  { %v857_v30 = vpop.f32.mrf.mxu2 }
0x1076   :  { %v861_v31 = vadd.f32 %v857_v30, %v730_v29 }
0x1078   :  { %1513 = vtanh.f32 %v861_v31  ;;  %v1411_v10 = vmul.f32 -1.442695, %v861_v31 }
0x107a   :  { %1515 = vpow2.f32 %v1411_v10 }
0x107d   :  { %v859_v32 = vpop.f32.mrf.mxu2 }
0x107e   :  { %v1514_v33 = vpop.eup %1513 }
0x107f   :  { %884 = vrot.lane.b32.xlu0 %v1514_v33, %s1631_s21 }
0x1080   :  { %v1516_v17 = vpop.eup %1515 }
0x1081   :  { %v865_v18 = vadd.f32 1.0, %v1516_v17 }
0x1083   :  { %1517 = vrcp.f32 %v865_v18  ;;  %v877_v42 = vand.u32 2147483648, %v865_v18  ;;  %vm871_vm4 = vweird.f32 %v865_v18  ;;  %v875_v43 = vand.u32 2147483647, %v865_v18 }
0x1085   :  { %v878_v45 = vor.u32 1.1754944e-38, %v877_v42  ;;  %vm876_vm6 = vcmp.eq.f32.partialorder %v875_v43, 8.507059e+37 }
0x1087   :  { %333 = vrot.lane.b32.xlu0 %v1769_v37, %s1632_s22 }
0x1089   :  { %v1518_v34 = vpop.eup %1517 }
0x108a   :  { %v867_v35 = vmul.f32 %v1518_v34, %v865_v18  ;;  %vm872_vm3 = vweird.f32 %v1518_v34 }
0x108b   :  { %vm873_vm5 = vmor %vm871_vm4, %vm872_vm3 }
0x108c   :  { %v868_v36 = vsub.f32 1.0, %v867_v35 }
0x108e   :  { %v869_v40 = vmul.f32 %v1518_v34, %v868_v36 }
0x1090   :  { %v870_v41 = vadd.f32 %v1518_v34, %v869_v40 }
0x1092   :  { %v874_v44 = vsel %vm873_vm5, %v1518_v34, %v870_v41 }
0x1093   :  { %v879_v37 = vsel %vm876_vm6, %v878_v45, %v874_v44 }
0x1094   :  { %v882_v49 = vmul.f32 %v879_v37, %v828_v14 }
0x10f1   :  { %v885_v46 = vpop.permute.xlu0 %884 }
0x10f2   :  { %v887_v47 = vmul.f32 %v885_v46, %v879_v37 }
0x10f4   :  { %889 = vrot.lane.b32.xlu1 %v887_v47, %s1631_s21 }
0x10f9   :  { %v334_v48 = vpop.permute.xlu0 %333 }
0x10fa   :  { %337 = vst.msk [vmem:[#allocation3 + $0x10] sm:$0xff] %vm36_vm0, %v334_v48 }
0x10fc   :  { %399 = vrot.lane.b32.xlu1 %v1786_v6, %s1632_s22 }
0x1101   :  { %v676_v54 = vld [vmem:[#allocation3 + $0x10] sm:$0xff] }
0x1166   :  { %v890_v50 = vpop.permute.xlu1 %889 }
0x1167   :  { %v892_v51 = vadd.f32 %v890_v50, %v882_v49 }
0x1169   :  { %1519 = vtanh.f32 %v892_v51 }
0x116e   :  { %v400_v52 = vpop.permute.xlu1 %399 }
0x116f   :  { %v1520_v53 = vpop.eup %1519  ;;  %403 = vst.msk [vmem:[#allocation3 + $0x18] sm:$0xff] %vm36_vm0, %v400_v52 }
0x1170   :  { %895 = vrot.lane.b32.xlu2 %v1520_v53, %s1631_s21 }
0x1176   :  { %v677_v55 = vld [vmem:[#allocation3 + $0x18] sm:$0xff] }
0x1177   :  { %v683_v56 = vpack.c.bf16 %v677_v55, %v676_v54 }
0x1179   :  { %1397 = vmatmul.msk.bf16.gmra.mxu3 %vm36_vm0, %v683_v56 }
0x11ca   :  { %v896_v57 = vpop.permute.xlu2 %895 }
0x11cb   :  { %v1905_v58 = vmul.f32 %v896_v57, %v879_v37 }
0x11cd   :  { %v906_v6 = vpack.c.bf16 %v1905_v58, %v1905_v58 }
0x11cf   :  { %908 = vrot.lane.b32.xlu2 %v906_v6, %s1632_s22 }
0x11fc   :  { %v732_v39 = vpop.f32.mrf.mxu3 }
0x11fd   :  { %v733_v61 = vadd.f32 %v1863_v28, %v732_v39 }
0x1204   :  { %v734_v17 = vpop.f32.mrf.mxu3 }
0x1205   :  { %v735_v18 = vadd.f32 %v1863_v28, %v734_v17 }
0x1229   :  { %v909_v59 = vpop.permute.xlu2 %908 }
0x122a   :  { %1413 = vmatmul.msk.bf16.vlgmr.msrb.gmra.mxu0 %vm36_vm0, %v909_v59 }
0x12a7   :  { %v922_v62 = vpop.f32.mrf.mxu0 }
0x12a8   :  { %v926_v63 = vadd.f32 %v922_v62, %v733_v61 }
0x12aa   :  { %1521 = vtanh.f32 %v926_v63  ;;  %v1414_v2 = vmul.f32 -1.442695, %v926_v63 }
0x12ac   :  { %1523 = vpow2.f32 %v1414_v2 }
0x12af   :  { %v924_v0 = vpop.f32.mrf.mxu0 }
0x12b0   :  { %v1522_v1 = vpop.eup %1521 }
0x12b1   :  { %949 = vrot.lane.b32.xlu0 %v1522_v1, %s1631_s21 }
0x12b2   :  { %v1524_v4 = vpop.eup %1523 }
0x12b3   :  { %v930_v5 = vadd.f32 1.0, %v1524_v4 }
0x12b5   :  { %1525 = vrcp.f32 %v930_v5  ;;  %v942_v15 = vand.u32 2147483648, %v930_v5  ;;  %vm936_vm8 = vweird.f32 %v930_v5  ;;  %v940_v16 = vand.u32 2147483647, %v930_v5 }
0x12b7   :  { %v943_v20 = vor.u32 1.1754944e-38, %v942_v15  ;;  %vm941_vm10 = vcmp.eq.f32.partialorder %v940_v16, 8.507059e+37 }
0x12bb   :  { %v1526_v8 = vpop.eup %1525 }
0x12bc   :  { %v932_v9 = vmul.f32 %v1526_v8, %v930_v5  ;;  %vm937_vm7 = vweird.f32 %v1526_v8 }
0x12bd   :  { %vm938_vm9 = vmor %vm936_vm8, %vm937_vm7 }
0x12be   :  { %v933_v11 = vsub.f32 1.0, %v932_v9 }
0x12c0   :  { %v934_v13 = vmul.f32 %v1526_v8, %v933_v11 }
0x12c2   :  { %v935_v14 = vadd.f32 %v1526_v8, %v934_v13 }
0x12c4   :  { %v939_v3 = vsel %vm938_vm9, %v1526_v8, %v935_v14 }
0x12c5   :  { %v944_v23 = vsel %vm941_vm10, %v943_v20, %v939_v3 }
0x12c6   :  { %v947_v26 = vmul.f32 %v944_v23, %v892_v51 }
0x1323   :  { %v950_v22 = vpop.permute.xlu0 %949 }
0x1324   :  { %v952_v24 = vmul.f32 %v950_v22, %v944_v23 }
0x1326   :  { %954 = vrot.lane.b32.xlu1 %v952_v24, %s1631_s21 }
0x1398   :  { %v955_v27 = vpop.permute.xlu1 %954 }
0x1399   :  { %v957_v29 = vadd.f32 %v955_v27, %v947_v26 }
0x139b   :  { %1527 = vtanh.f32 %v957_v29 }
0x13a1   :  { %v1528_v30 = vpop.eup %1527 }
0x13a2   :  { %960 = vrot.lane.b32.xlu2 %v1528_v30, %s1631_s21 }
0x13fc   :  { %v961_v31 = vpop.permute.xlu2 %960 }
0x13fd   :  { %v1917_v32 = vmul.f32 %v961_v31, %v944_v23 }
0x13ff   :  { %v971_v33 = vpack.c.bf16 %v1917_v32, %v1917_v32 }
0x1401   :  { %973 = vrot.lane.b32.xlu0 %v971_v33, %s1632_s22 }
0x1473   :  { %v974_v10 = vpop.permute.xlu0 %973 }
0x1474   :  { %1416 = vmatmul.msk.bf16.vlgmr.msra.gmra.mxu1 %vm36_vm0, %v974_v10 }
0x14f1   :  { %v987_v34 = vpop.f32.mrf.mxu1 }
0x14f2   :  { %v991_v35 = vadd.f32 %v987_v34, %v735_v18 }
0x14f4   :  { %1529 = vtanh.f32 %v991_v35  ;;  %v1417_v41 = vmul.f32 -1.442695, %v991_v35 }
0x14f6   :  { %1531 = vpow2.f32 %v1417_v41 }
0x14f9   :  { %v989_v36 = vpop.f32.mrf.mxu1 }
0x14fa   :  { %v1530_v40 = vpop.eup %1529 }
0x14fb   :  { %1014 = vrot.lane.b32.xlu1 %v1530_v40, %s1631_s21 }
0x14fc   :  { %v1532_v42 = vpop.eup %1531 }
0x14fd   :  { %v995_v43 = vadd.f32 1.0, %v1532_v42 }
0x14ff   :  { %1533 = vrcp.f32 %v995_v43  ;;  %v1007_v48 = vand.u32 2147483648, %v995_v43  ;;  %vm1001_vm12 = vweird.f32 %v995_v43  ;;  %v1005_v49 = vand.u32 2147483647, %v995_v43 }
0x1501   :  { %v1008_v51 = vor.u32 1.1754944e-38, %v1007_v48  ;;  %vm1006_vm14 = vcmp.eq.f32.partialorder %v1005_v49, 8.507059e+37 }
0x1503   :  { %465 = vrot.lane.b32.xlu1 %v1796_v38, %s1632_s22 }
0x1505   :  { %v1534_v44 = vpop.eup %1533 }
0x1506   :  { %v997_v45 = vmul.f32 %v1534_v44, %v995_v43  ;;  %vm1002_vm11 = vweird.f32 %v1534_v44 }
0x1507   :  { %vm1003_vm13 = vmor %vm1001_vm12, %vm1002_vm11 }
0x1508   :  { %v998_v46 = vsub.f32 1.0, %v997_v45 }
0x150a   :  { %v999_v37 = vmul.f32 %v1534_v44, %v998_v46 }
0x150c   :  { %v1000_v47 = vadd.f32 %v1534_v44, %v999_v37 }
0x150e   :  { %v1004_v50 = vsel %vm1003_vm13, %v1534_v44, %v1000_v47 }
0x150f   :  { %v1009_v38 = vsel %vm1006_vm14, %v1008_v51, %v1004_v50 }
0x1510   :  { %v1012_v55 = vmul.f32 %v1009_v38, %v957_v29  ;;  %v1577_v29 = vld [vmem:[%s2058_s3] ss:$0 sm:$0xff]  ;;  %s1633_s3 = smov 96  }
0x1511   :  { %v113_v30 = vadd.f32 %v1577_v29, %v1911_v60 }
0x1513   :  { %v624_v33 = vadd.f32 %v1892_v25, %v113_v30 }
0x1515   :  { %v1387_v41 = vmul.f32 -1.442695, %v624_v33 }
0x156d   :  { %v1015_v52 = vpop.permute.xlu1 %1014 }
0x156e   :  { %v1017_v53 = vmul.f32 %v1015_v52, %v1009_v38 }
0x1570   :  { %1019 = vrot.lane.b32.xlu2 %v1017_v53, %s1631_s21 }
0x1575   :  { %v466_v54 = vpop.permute.xlu1 %465 }
0x1576   :  { %469 = vst.msk [vmem:[#allocation3 + $0x20] sm:$0xff] %vm36_vm0, %v466_v54 }
0x1578   :  { %531 = vrot.lane.b32.xlu2 %v1822_v12, %s1632_s22 }
0x157d   :  { %v678_v39 = vld [vmem:[#allocation3 + $0x20] sm:$0xff] }
0x15ca   :  { %v1020_v56 = vpop.permute.xlu2 %1019 }
0x15cb   :  { %v1022_v57 = vadd.f32 %v1020_v56, %v1012_v55 }
0x15cd   :  { %1535 = vtanh.f32 %v1022_v57 }
0x15d2   :  { %v532_v6 = vpop.permute.xlu2 %531 }
0x15d3   :  { %v1536_v59 = vpop.eup %1535  ;;  %535 = vst.msk [vmem:[#allocation3 + $0x28] sm:$0xff] %vm36_vm0, %v532_v6 }
0x15d4   :  { %1025 = vrot.lane.b32.xlu0 %v1536_v59, %s1631_s21 }
0x15da   :  { %v679_v61 = vld [vmem:[#allocation3 + $0x28] sm:$0xff] }
0x15db   :  { %v684_v62 = vpack.c.bf16 %v679_v61, %v678_v39 }
0x15dd   :  { %1398 = vmatmul.msk.bf16.gmra.mxu3 %vm36_vm0, %v684_v62 }
0x1646   :  { %v1026_v63 = vpop.permute.xlu0 %1025 }
0x1647   :  { %v1934_v0 = vmul.f32 %v1026_v63, %v1009_v38 }
0x1649   :  { %v1036_v12 = vpack.c.bf16 %v1934_v0, %v1934_v0 }
0x164b   :  { %1038 = vrot.lane.b32.xlu0 %v1036_v12, %s1632_s22 }
0x1660   :  { %v737_v2 = vpop.f32.mrf.mxu3 }
0x1661   :  { %v738_v4 = vadd.f32 %v1863_v28, %v737_v2 }
0x16bd   :  { %v1039_v1 = vpop.permute.xlu0 %1038 }
0x16be   :  { %1419 = vmatmul.msk.bf16.vlgmr.msra.gmra.mxu2 %vm36_vm0, %v1039_v1 }
0x1741   :  { %v1052_v5 = vpop.f32.mrf.mxu2 }
0x1742   :  { %v1056_v8 = vadd.f32 %v1052_v5, %v738_v4 }
0x1744   :  { %1537 = vtanh.f32 %v1056_v8  ;;  %v1420_v13 = vmul.f32 -1.442695, %v1056_v8 }
0x1746   :  { %1539 = vpow2.f32 %v1420_v13 }
0x1749   :  { %v1054_v9 = vpop.f32.mrf.mxu2 }
0x174a   :  { %v1538_v11 = vpop.eup %1537 }
0x174b   :  { %1079 = vrot.lane.b32.xlu1 %v1538_v11, %s1631_s21 }
0x174c   :  { %v1540_v14 = vpop.eup %1539 }
0x174d   :  { %v1060_v15 = vadd.f32 1.0, %v1540_v14 }
0x174f   :  { %1541 = vrcp.f32 %v1060_v15  ;;  %v1072_v24 = vand.u32 2147483648, %v1060_v15  ;;  %vm1066_vm1 = vweird.f32 %v1060_v15  ;;  %v1070_v26 = vand.u32 2147483647, %v1060_v15 }
0x1750   :  { %1543 = vtanh.f32 %v624_v33 }
0x1751   :  { %v1073_v31 = vor.u32 1.1754944e-38, %v1072_v24  ;;  %vm1071_vm3 = vcmp.eq.f32.partialorder %v1070_v26, 8.507059e+37 }
0x1755   :  { %v1542_v16 = vpop.eup %1541 }
0x1756   :  { %v1062_v3 = vmul.f32 %v1542_v16, %v1060_v15  ;;  %vm1067_vm15 = vweird.f32 %v1542_v16  ;;  %v1544_v34 = vpop.eup %1543 }
0x1757   :  { %vm1068_vm2 = vmor %vm1066_vm1, %vm1067_vm15 }
0x1758   :  { %v1063_v20 = vsub.f32 1.0, %v1062_v3 }
0x175a   :  { %v1064_v22 = vmul.f32 %v1542_v16, %v1063_v20 }
0x175c   :  { %v1065_v23 = vadd.f32 %v1542_v16, %v1064_v22 }
0x175e   :  { %v1069_v27 = vsel %vm1068_vm2, %v1542_v16, %v1065_v23 }
0x175f   :  { %v1074_v17 = vsel %vm1071_vm3, %v1073_v31, %v1069_v27 }
0x1760   :  { %v1077_v35 = vmul.f32 %v1074_v17, %v1022_v57  ;;  %v739_v57 = vpop.f32.mrf.mxu3 }
0x1761   :  { %v740_v6 = vadd.f32 %v1863_v28, %v739_v57 }
0x17bd   :  { %v1080_v10 = vpop.permute.xlu1 %1079 }
0x17be   :  { %v1082_v18 = vmul.f32 %v1080_v10, %v1074_v17 }
0x17c0   :  { %1084 = vrot.lane.b32.xlu2 %v1082_v18, %s1631_s21 }
0x17c8   :  { %647 = vrot.lane.b32.xlu2 %v1544_v34, %s1631_s21 }
0x181a   :  { %v1085_v36 = vpop.permute.xlu2 %1084 }
0x181b   :  { %v1949_v40 = vadd.f32 %v1085_v36, %v1077_v35 }
0x181d   :  { %1545 = vtanh.f32 %v1949_v40 }
0x181e   :  { %1547 = vpow2.f32 %v1387_v41 }
0x1822   :  { %v648_v53 = vpop.permute.xlu2 %647 }
0x1823   :  { %v1546_v60 = vpop.eup %1545 }
0x1824   :  { %1090 = vrot.lane.b32.xlu0 %v1546_v60, %s1631_s21  ;;  %v1548_v25 = vpop.eup %1547 }
0x1825   :  { %v628_v42 = vadd.f32 1.0, %v1548_v25 }
0x1827   :  { %1549 = vrcp.f32 %v628_v42  ;;  %v640_v50 = vand.u32 2147483648, %v628_v42  ;;  %vm634_vm5 = vweird.f32 %v628_v42  ;;  %v638_v51 = vand.u32 2147483647, %v628_v42 }
0x1829   :  { %v641_v38 = vor.u32 1.1754944e-38, %v640_v50  ;;  %vm639_vm7 = vcmp.eq.f32.partialorder %v638_v51, 8.507059e+37 }
0x182d   :  { %v1550_v43 = vpop.eup %1549 }
0x182e   :  { %v630_v44 = vmul.f32 %v1550_v43, %v628_v42  ;;  %vm635_vm4 = vweird.f32 %v1550_v43 }
0x182f   :  { %vm636_vm6 = vmor %vm634_vm5, %vm635_vm4 }
0x1830   :  { %v631_v45 = vsub.f32 1.0, %v630_v44 }
0x1832   :  { %v632_v46 = vmul.f32 %v1550_v43, %v631_v45 }
0x1834   :  { %v633_v48 = vadd.f32 %v1550_v43, %v632_v46 }
0x1836   :  { %v637_v52 = vsel %vm636_vm6, %v1550_v43, %v633_v48 }
0x1837   :  { %v642_v54 = vsel %vm639_vm7, %v641_v38, %v637_v52 }
0x1838   :  { %v650_v55 = vmul.f32 %v648_v53, %v642_v54  ;;  %v645_v62 = vmul.f32 %v642_v54, %v1871_v7 }
0x1896   :  { %v1091_v37 = vpop.permute.xlu0 %1090 }
0x1897   :  { %v1953_v47 = vmul.f32 %v1091_v37, %v1074_v17 }
0x1899   :  { %v1101_v49 = vpack.c.bf16 %v1953_v47, %v1953_v47 }
0x189b   :  { %1103 = vrot.lane.b32.xlu1 %v1101_v49, %s1632_s22 }
0x18a3   :  { %652 = vrot.lane.b32.xlu1 %v650_v55, %s1631_s21 }
0x190d   :  { %v1104_v56 = vpop.permute.xlu1 %1103 }
0x190e   :  { %1422 = vmatmul.msk.bf16.vlgmr.msra.gmra.mxu0 %vm36_vm0, %v1104_v56 }
0x1915   :  { %v653_v61 = vpop.permute.xlu1 %652 }
0x1916   :  { %v1962_v63 = vadd.f32 %v653_v61, %v645_v62 }
0x198b   :  { %v1117_v59 = vpop.f32.mrf.mxu0 }
0x198c   :  { %v1121_v39 = vadd.f32 %v1117_v59, %v740_v6 }
0x198e   :  { %1551 = vtanh.f32 %v1121_v39  ;;  %v1423_v4 = vmul.f32 -1.442695, %v1121_v39 }
0x198f   :  { %1553 = vtanh.f32 %v1962_v63 }
0x1990   :  { %1555 = vpow2.f32 %v1423_v4 }
0x1993   :  { %v1119_v12 = vpop.f32.mrf.mxu0 }
0x1994   :  { %v1552_v1 = vpop.eup %1551 }
0x1995   :  { %1144 = vrot.lane.b32.xlu0 %v1552_v1, %s1631_s21  ;;  %v1554_v2 = vpop.eup %1553 }
0x1996   :  { %v1556_v5 = vpop.eup %1555 }
0x1997   :  { %v1125_v8 = vadd.f32 1.0, %v1556_v5 }
0x1999   :  { %1557 = vrcp.f32 %v1125_v8  ;;  %v1137_v15 = vand.u32 2147483648, %v1125_v8  ;;  %vm1131_vm9 = vweird.f32 %v1125_v8  ;;  %v1135_v16 = vand.u32 2147483647, %v1125_v8 }
0x199b   :  { %v1138_v20 = vor.u32 1.1754944e-38, %v1137_v15  ;;  %vm1136_vm11 = vcmp.eq.f32.partialorder %v1135_v16, 8.507059e+37 }
0x199d   :  { %658 = vrot.lane.b32.xlu0 %v1554_v2, %s1631_s21 }
0x199f   :  { %v1558_v9 = vpop.eup %1557 }
0x19a0   :  { %v1127_v11 = vmul.f32 %v1558_v9, %v1125_v8  ;;  %vm1132_vm8 = vweird.f32 %v1558_v9 }
0x19a1   :  { %vm1133_vm10 = vmor %vm1131_vm9, %vm1132_vm8 }
0x19a2   :  { %v1128_v13 = vsub.f32 1.0, %v1127_v11 }
0x19a4   :  { %v1129_v7 = vmul.f32 %v1558_v9, %v1128_v13 }
0x19a6   :  { %v1130_v14 = vadd.f32 %v1558_v9, %v1129_v7 }
0x19a8   :  { %v1134_v3 = vsel %vm1133_vm10, %v1558_v9, %v1130_v14 }
0x19a9   :  { %v1139_v23 = vsel %vm1136_vm11, %v1138_v20, %v1134_v3 }
0x19aa   :  { %v1142_v29 = vmul.f32 %v1139_v23, %v1949_v40 }
0x1a07   :  { %v1145_v22 = vpop.permute.xlu0 %1144 }
0x1a08   :  { %v1147_v24 = vmul.f32 %v1145_v22, %v1139_v23 }
0x1a0a   :  { %1149 = vrot.lane.b32.xlu2 %v1147_v24, %s1631_s21 }
0x1a0f   :  { %v659_v26 = vpop.permute.xlu0 %658 }
0x1a10   :  { %v661_v27 = vmul.f32 %v659_v26, %v642_v54 }
0x1a12   :  { %597 = vrot.lane.b32.xlu2 %v1876_v19, %s1632_s22  ;;  %663 = vrot.lane.b32.xlu0 %v661_v27, %s1632_s22 }
0x1a64   :  { %v1150_v30 = vpop.permute.xlu2 %1149 }
0x1a65   :  { %v1152_v31 = vadd.f32 %v1150_v30, %v1142_v29 }
0x1a67   :  { %1559 = vtanh.f32 %v1152_v31 }
0x1a6c   :  { %v598_v33 = vpop.permute.xlu2 %597 }
0x1a6d   :  { %v1560_v10 = vpop.eup %1559  ;;  %601 = vst.msk [vmem:[#allocation3 + $0x30] sm:$0xff] %vm36_vm0, %v598_v33 }
0x1a6e   :  { %1155 = vrot.lane.b32.xlu1 %v1560_v10, %s1631_s21 }
0x1a74   :  { %v680_v18 = vld [vmem:[#allocation3 + $0x30] sm:$0xff] }
0x1a84   :  { %v664_v17 = vpop.permute.xlu0 %663 }
0x1a85   :  { %667 = vst.msk [vmem:[#allocation3 + $0x38] sm:$0xff] %vm36_vm0, %v664_v17 }
0x1a86   :  { %668 = vst.msk [vmem:[#allocation4] sm:$0xff] %vm36_vm0, %v664_v17 }
0x1a8c   :  { %v681_v19 = vld [vmem:[#allocation3 + $0x38] sm:$0xff] }
0x1a8d   :  { %v685_v34 = vpack.c.bf16 %v681_v19, %v680_v18  ;;  %v1304_v35 = vld [vmem:[#allocation4] sm:$0xff] }
0x1a8e   :  { %1306 = vst.msk [vmem:[#allocation6] sm:$0xff] %vm36_vm0, %v1304_v35 }
0x1a8f   :  { %1399 = vmatmul.msk.bf16.gmra.mxu3 %vm36_vm0, %v685_v34 }
0x1ae0   :  { %v1156_v36 = vpop.permute.xlu1 %1155 }
0x1ae1   :  { %v1978_v40 = vmul.f32 %v1156_v36, %v1139_v23 }
0x1ae3   :  { %v1166_v60 = vpack.c.bf16 %v1978_v40, %v1978_v40 }
0x1ae5   :  { %1168 = vrot.lane.b32.xlu1 %v1166_v60, %s1632_s22 }
0x1b12   :  { %v742_v25 = vpop.f32.mrf.mxu3 }
0x1b13   :  { %v743_v42 = vadd.f32 %v1863_v28, %v742_v25 }
0x1b1a   :  { %v744_v9 = vpop.f32.mrf.mxu3 }
0x1b1b   :  { %v745_v11 = vadd.f32 %v1863_v28, %v744_v9 }
0x1b57   :  { %v1169_v41 = vpop.permute.xlu1 %1168 }
0x1b58   :  { %1425 = vmatmul.msk.bf16.vlgmr.msrb.gmra.mxu1 %vm36_vm0, %v1169_v41 }
0x1bd5   :  { %v1182_v43 = vpop.f32.mrf.mxu1 }
0x1bd6   :  { %v1186_v44 = vadd.f32 %v1182_v43, %v743_v42 }
0x1bd8   :  { %1561 = vtanh.f32 %v1186_v44  ;;  %v1426_v37 = vmul.f32 -1.442695, %v1186_v44 }
0x1bda   :  { %1563 = vpow2.f32 %v1426_v37 }
0x1bdd   :  { %v1184_v45 = vpop.f32.mrf.mxu1 }
0x1bde   :  { %v1562_v46 = vpop.eup %1561 }
0x1bdf   :  { %1209 = vrot.lane.b32.xlu2 %v1562_v46, %s1631_s21 }
0x1be0   :  { %v1564_v48 = vpop.eup %1563 }
0x1be1   :  { %v1190_v49 = vadd.f32 1.0, %v1564_v48 }
0x1be3   :  { %1565 = vrcp.f32 %v1190_v49  ;;  %v1202_v54 = vand.u32 2147483648, %v1190_v49  ;;  %vm1196_vm13 = vweird.f32 %v1190_v49  ;;  %v1200_v55 = vand.u32 2147483647, %v1190_v49 }
0x1be5   :  { %v1203_v57 = vor.u32 1.1754944e-38, %v1202_v54  ;;  %vm1201_vm15 = vcmp.eq.f32.partialorder %v1200_v55, 8.507059e+37 }
0x1be9   :  { %v1566_v50 = vpop.eup %1565 }
0x1bea   :  { %v1192_v51 = vmul.f32 %v1566_v50, %v1190_v49  ;;  %vm1197_vm12 = vweird.f32 %v1566_v50 }
0x1beb   :  { %vm1198_vm14 = vmor %vm1196_vm13, %vm1197_vm12 }
0x1bec   :  { %v1193_v52 = vsub.f32 1.0, %v1192_v51 }
0x1bee   :  { %v1194_v38 = vmul.f32 %v1566_v50, %v1193_v52 }
0x1bf0   :  { %v1195_v53 = vadd.f32 %v1566_v50, %v1194_v38 }
0x1bf2   :  { %v1199_v56 = vsel %vm1198_vm14, %v1566_v50, %v1195_v53 }
0x1bf3   :  { %v1204_v59 = vsel %vm1201_vm15, %v1203_v57, %v1199_v56 }
0x1bf4   :  { %v1207_v61 = vmul.f32 %v1204_v59, %v1152_v31 }
0x1c39   :  { %v1210_v6 = vpop.permute.xlu2 %1209 }
0x1c3a   :  { %v1212_v39 = vmul.f32 %v1210_v6, %v1204_v59 }
0x1c3c   :  { %1214 = vrot.lane.b32.xlu0 %v1212_v39, %s1631_s21 }
0x1cae   :  { %v1215_v62 = vpop.permute.xlu0 %1214 }
0x1caf   :  { %v1217_v12 = vadd.f32 %v1215_v62, %v1207_v61 }
0x1cb1   :  { %1567 = vtanh.f32 %v1217_v12 }
0x1cb7   :  { %v1568_v1 = vpop.eup %1567 }
0x1cb8   :  { %1220 = vrot.lane.b32.xlu1 %v1568_v1, %s1631_s21 }
0x1d2a   :  { %v1221_v2 = vpop.permute.xlu1 %1220 }
0x1d2b   :  { %v1223_v4 = vmul.f32 %v1221_v2, %v1204_v59 }
0x1d2d   :  { %v1231_v5 = vpack.c.bf16 %v1223_v4, %v1223_v4 }
0x1d2f   :  { %1233 = vrot.lane.b32.xlu2 %v1231_v5, %s1632_s22 }
0x1d89   :  { %v1234_v8 = vpop.permute.xlu2 %1233 }
0x1d8a   :  { %1428 = vmatmul.msk.bf16.vlgmr.msrb.gmra.mxu2 %vm36_vm0, %v1234_v8 }
0x1e0d   :  { %v1247_v13 = vpop.f32.mrf.mxu2 }
0x1e0e   :  { %v1251_v7 = vadd.f32 %v1247_v13, %v745_v11 }
0x1e10   :  { %1569 = vtanh.f32 %v1251_v7  ;;  %v1429_v28 = vmul.f32 -1.442695, %v1251_v7 }
0x1e12   :  { %1571 = vpow2.f32 %v1429_v28 }
0x1e15   :  { %v1249_v14 = vpop.f32.mrf.mxu2 }
0x1e16   :  { %v1570_v15 = vpop.eup %1569 }
0x1e17   :  { %1274 = vrot.lane.b32.xlu0 %v1570_v15, %s1631_s21 }
0x1e18   :  { %v1572_v16 = vpop.eup %1571 }
0x1e19   :  { %v1255_v3 = vadd.f32 1.0, %v1572_v16 }
0x1e1b   :  { %1573 = vrcp.f32 %v1255_v3  ;;  %vm1261_vm2 = vweird.f32 %v1255_v3  ;;  %v1265_v27 = vand.u32 2147483647, %v1255_v3 }
0x1e1d   :  { %vm1266_vm4 = vcmp.eq.f32.partialorder %v1265_v27, 8.507059e+37 }
0x1e1f   :  { %670 = vrot.lane.b32.xlu0 %v1962_v63, %s1633_s3  ;;  %v1267_v63 = vand.u32 2147483648, %v1255_v3 }
0x1e21   :  { %v1574_v20 = vpop.eup %1573  ;;  %v1268_v29 = vor.u32 1.1754944e-38, %v1267_v63 }
0x1e22   :  { %v1257_v22 = vmul.f32 %v1574_v20, %v1255_v3  ;;  %vm1262_vm1 = vweird.f32 %v1574_v20 }
0x1e23   :  { %vm1263_vm3 = vmor %vm1261_vm2, %vm1262_vm1 }
0x1e24   :  { %v1258_v23 = vsub.f32 1.0, %v1257_v22 }
0x1e26   :  { %v1259_v24 = vmul.f32 %v1574_v20, %v1258_v23 }
0x1e27   :  { %836 = vrot.lane.b32.xlu0 %v1881_v21, %s1632_s22 }
0x1e28   :  { %v1260_v26 = vadd.f32 %v1574_v20, %v1259_v24 }
0x1e2a   :  { %v1264_v21 = vsel %vm1263_vm3, %v1574_v20, %v1260_v26 }
0x1e2b   :  { %v1269_v30 = vsel %vm1266_vm4, %v1268_v29, %v1264_v21 }
0x1e2c   :  { %v1272_v34 = vmul.f32 %v1269_v30, %v1217_v12 }
0x1e2f   :  { %1030 = vrot.lane.b32.xlu0 %v1934_v0, %s1632_s22 }
0x1e37   :  { %1225 = vrot.lane.b32.xlu0 %v1223_v4, %s1632_s22 }
0x1e89   :  { %v1275_v0 = vpop.permute.xlu0 %1274 }
0x1e8a   :  { %v1277_v31 = vmul.f32 %v1275_v0, %v1269_v30 }
0x1e8c   :  { %1279 = vrot.lane.b32.xlu1 %v1277_v31, %s1631_s21 }
0x1e91   :  { %v671_v33 = vpop.permute.xlu0 %670 }
0x1e92   :  { %673 = vst.msk [vmem:[#allocation5] sm:$0xff] %vm36_vm0, %v671_v33 }
0x1e99   :  { %v837_v10 = vpop.permute.xlu0 %836  ;;  %v1308_v17 = vld [vmem:[#allocation5] sm:$0xff] }
0x1e9a   :  { %839 = vst.msk [vmem:[%s2062_s7] sm:$0xff] %vm36_vm0, %v837_v10 }
0x1e9b   :  { %1310 = vst.msk [vmem:[#allocation8] sm:$0xff] %vm36_vm0, %v1308_v17 }
0x1ea1   :  { %v1031_v18 = vpop.permute.xlu0 %1030 }
0x1ea2   :  { %1418 = vst.msk [vmem:[%s2062_s7 + $0x18] sm:$0xff] %vm36_vm0, %v1031_v18 }
0x1ea9   :  { %v1226_v19 = vpop.permute.xlu0 %1225 }
0x1eaa   :  { %1427 = vst.msk [vmem:[%s2062_s7 + $0x30] sm:$0xff] %vm36_vm0, %v1226_v19 }
0x1efe   :  { %v1280_v35 = vpop.permute.xlu1 %1279 }
0x1eff   :  { %v1282_v36 = vadd.f32 %v1280_v35, %v1272_v34 }
0x1f01   :  { %1575 = vtanh.f32 %v1282_v36 }
0x1f07   :  { %v1576_v60 = vpop.eup %1575 }
0x1f08   :  { %1285 = vrot.lane.b32.xlu2 %v1576_v60, %s1631_s21  ;;  %s1331_s21 = sshll.u32 %s1634_s28, 4  ;;  %s1332_s21 = int_to_ptr.vmem [resolvable:$true] %s1331_s21 }
0x1f10   :  { %1297 = vrot.lane.b32.xlu2 %v1282_v36, %s1633_s3 }
0x1f18   :  { %965 = vrot.lane.b32.xlu2 %v1917_v32, %s1632_s22 }
0x1f20   :  { %1160 = vrot.lane.b32.xlu2 %v1978_v40, %s1632_s22 }
0x1f62   :  { %v1286_v41 = vpop.permute.xlu2 %1285 }
0x1f63   :  { %v1288_v25 = vmul.f32 %v1286_v41, %v1269_v30 }
0x1f65   :  { %1290 = vrot.lane.b32.xlu1 %v1288_v25, %s1632_s22 }
0x1f6a   :  { %v1298_v42 = vpop.permute.xlu2 %1297 }
0x1f6b   :  { %1300 = vst.msk [vmem:[#allocation5 + $0x8] sm:$0xff] %vm36_vm0, %v1298_v42 }
0x1f6d   :  { %900 = vrot.lane.b32.xlu1 %v1905_v58, %s1632_s22 }
0x1f72   :  { %v966_v32 = vpop.permute.xlu2 %965  ;;  %v1309_v43 = vld [vmem:[#allocation5 + $0x8] sm:$0xff] }
0x1f73   :  { %1415 = vst.msk [vmem:[%s2062_s7 + $0x10] sm:$0xff] %vm36_vm0, %v966_v32 }
0x1f74   :  { %1311 = vst.msk [vmem:[#allocation8 + $0x8] sm:$0xff] %vm36_vm0, %v1309_v43 }
0x1f75   :  { %1095 = vrot.lane.b32.xlu1 %v1953_v47, %s1632_s22 }
0x1f76   :  { %1339 = dma.vmem_to_hbm [thread:$0]  %s1332_s21, 256, %s1334_s10, [#allocation9], %s1635_s13, %s1635_s13, %s1636_s4  }
0x1f7a   :  { %v1161_v58 = vpop.permute.xlu2 %1160 }
0x1f7b   :  { %1424 = vst.msk [vmem:[%s2062_s7 + $0x28] sm:$0xff] %vm36_vm0, %v1161_v58 }
0x1fd7   :  { %v1291_v40 = vpop.permute.xlu1 %1290 }
0x1fd8   :  { %1430 = vst.msk [vmem:[%s2062_s7 + $0x38] sm:$0xff] %vm36_vm0, %v1291_v40 }
0x1fd9   :  { %1295 = vst.msk [vmem:[#allocation4 + $0x8] sm:$0xff] %vm36_vm0, %v1291_v40 }
0x1fdf   :  { %v901_v47 = vpop.permute.xlu1 %900 }
0x1fe0   :  { %1412 = vst.msk [vmem:[%s2062_s7 + $0x8] sm:$0xff] %vm36_vm0, %v901_v47  ;;  %v1305_v44 = vld [vmem:[#allocation4 + $0x8] sm:$0xff] }
0x1fe1   :  { %1307 = vst.msk [vmem:[#allocation6 + $0x8] sm:$0xff] %vm36_vm0, %v1305_v44 }
0x1fe2   :  { %1326 = dma.vmem_to_hbm [thread:$0]  %s1319_s18, 256, %s1321_s20, [#allocation7], %s1635_s13, %s1635_s13, %s1636_s4  }
0x1fe7   :  { %v1096_v45 = vpop.permute.xlu1 %1095 }
0x1fe8   :  { %1421 = vst.msk [vmem:[%s2062_s7 + $0x20] sm:$0xff] %vm36_vm0, %v1096_v45 }
0x1fe9   :  { %1626 = dma.done.wait [#allocation7], 256  }
0x1fea   :  { %1627 = vsyncadd [#allocation7], 4294967040 }
0x1feb   :  { %1628 = dma.done.wait [#allocation9], 256  }
0x1fec   :  { %1629 = vsyncadd [#allocation9], 4294967040 }
0x1fed   :  { %1350 = vsyncpa [#allocation7], 1 }
0x1fee   :  { %1351 = vsyncpa [#allocation9], 1 }

</bundles_post_ra>
